<compile_context>
chip_gen: v7x
topology: tpu7x:2x2x1
jax: 0.10.0
libtpu: 0.0.40
codegen_flags: <defaults>
</compile_context>

<pallas_src>
import functools

import jax
import jax.numpy as jnp
import numpy as np
from jax.experimental import pallas as pl
from jax.experimental.pallas import tpu as pltpu

_BN_EPS = 1e-5

# ---------------------------------------------------------------------------
# Static layout of the packed parameter slab: f32, shape (_SLAB_ROWS, max(M0,256)).
# Row/column offsets are architecture constants (channels 3 -> 8 -> 16 are fixed),
# so they are plain Python ints baked into the kernel (static ref slices).
# ---------------------------------------------------------------------------
# group A: 8-row block (every parameter with 8 output channels)
_A_W1, _A_G1, _A_B1, _A_G2, _A_B2 = 0, 3, 4, 5, 6   # down0 conv1x1(3->8), bn1, bn2
_A_W2 = 7        # down0 3x3 conv (8, 72), tap-major columns
_A_WU0 = 79      # up[0] conv1x1 (8, 16)
_A_BU0 = 95
_A_WU1 = 96      # up[1] conv1x1 (8, 8)
_A_BU1 = 104
# group B: 16-row block (every parameter with 16 output channels)
_B_W1, _B_G1, _B_B1, _B_G2, _B_B2 = 0, 8, 9, 10, 11  # down1 conv1x1(8->16), bn1, bn2
_B_W2 = 12       # down1 3x3 conv (16, 144)
_B_WB = 156      # bottleneck conv1x1 (16, 16)
_B_BB = 172
# folded head: 4-row block (rows 0..2 -> out, row 3 -> heat)
_HD_W, _HD_B = 0, 8
# row offsets (weight groups 8-aligned; masks are read row-by-row so need no alignment)
_ROW_A, _ROW_B, _ROW_HEAD = 0, 8, 24
_ROW_MASK0, _ROW_MASK1 = 28, 37      # 9 edge-mask rows per conv resolution
_SLAB_ROWS = 48


# ---------------------------------------------------------------------------
# The fused kernel. All activations are channel-major (C, M) values with
# M = N*H*W flattened onto the lane axis (lane-dense), channels on sublanes.
# ---------------------------------------------------------------------------
def _hourglass_kernel(x_ref, prm_ref, s0_ref, s1_ref, u1_ref, u0_ref,
                      out_ref, heat_ref, *, N, H, W):
    f32 = jnp.float32
    HW = H * W
    M0, M1 = N * HW, (N * HW) // 4
    H1, W1 = H // 2, W // 2
    A, B, HD = _ROW_A, _ROW_B, _ROW_HEAD

    def roll(v, s):
        """out[..., m] = v[..., (m + s) % M] (wrap; callers mask invalid lanes)."""
        k = (-s) % v.shape[-1]
        return v if k == 0 else pltpu.roll(v, shift=k, axis=v.ndim - 1)

    def bn_relu(y, g, b):
        """Training-mode BatchNorm (stats over lanes = N*H*W, biased variance,
        eps=1e-5) + ReLU.  mean and E[y^2] come from ONE fused cross-lane
        reduction (var = E[y^2] - mean^2); normalize+affine folded to one pass."""
        c = y.shape[0]
        stats = jnp.mean(jnp.concatenate([y, y * y], axis=0),
                         axis=-1, keepdims=True)                    # (2C, 1)
        mean = stats[:c]
        var = stats[c:] - mean * mean
        scale = g * jax.lax.rsqrt(var + _BN_EPS)
        return jnp.maximum(y * scale + (b - mean * scale), 0.0)

    def conv3x3(y, wrow, wcol, cout, mrow, h, w, m):
        """3x3 conv, stride 1, zero pad 1, on a (Cin, M) channel-major value.

        Per-tap accumulation: 9 small MXU matmuls into one f32 accumulator
        (no (9*Cin, M) patch slab to spill).  Each tap is a lane roll of y times
        a host-precomputed 0/1 edge-mask row; the center tap needs neither.
        """
        cin = y.shape[0]
        acc = None
        t = 0
        for dy in (-1, 0, 1):
            for dx in (-1, 0, 1):
                wt = prm_ref[wrow:wrow + cout,
                             wcol + t * cin:wcol + (t + 1) * cin]   # (Cout, Cin)
                if dy == 0 and dx == 0:
                    tap = y
                else:
                    mask = prm_ref[mrow + t:mrow + t + 1, 0:m]      # (1, M) 0/1
                    tap = roll(y, dy * w + dx) * mask
                part = jnp.dot(wt, tap, preferred_element_type=f32)
                acc = part if acc is None else acc + part
                t += 1
        return acc

    def maxpool(z, w_img, sel_ref):
        """2x2 / stride-2 max pool: roll+max window max, then the bf16 0/1
        compaction matmul picks the top-left lane of every window (exact)."""
        m01 = jnp.maximum(z, roll(z, 1))
        m = jnp.maximum(m01, roll(m01, w_img))
        return jnp.dot(m, sel_ref[...].astype(f32), preferred_element_type=f32)

    # ---- input relayout: (N, 3, H*W) -> channel-major (3, N*H*W) -----------
    x = jnp.concatenate([x_ref[n] for n in range(N)], axis=-1)      # (3, M0)

    # ---- down[0]: conv1x1 -> BN+ReLU -> conv3x3 -> BN+ReLU -> maxpool ------
    y = bn_relu(jnp.dot(prm_ref[A:A + 8, _A_W1:_A_W1 + 3], x,
                        preferred_element_type=f32),
                prm_ref[A:A + 8, _A_G1:_A_G1 + 1],
                prm_ref[A:A + 8, _A_B1:_A_B1 + 1])                   # (8, M0)
    z = bn_relu(conv3x3(y, A, _A_W2, 8, _ROW_MASK0, H, W, M0),
                prm_ref[A:A + 8, _A_G2:_A_G2 + 1],
                prm_ref[A:A + 8, _A_B2:_A_B2 + 1])                   # (8, M0)
    ds0 = maxpool(z, W, s0_ref)                                      # (8, M1)

    # ---- down[1] ------------------------------------------------------------
    y = bn_relu(jnp.dot(prm_ref[B:B + 16, _B_W1:_B_W1 + 8], ds0,
                        preferred_element_type=f32),
                prm_ref[B:B + 16, _B_G1:_B_G1 + 1],
                prm_ref[B:B + 16, _B_B1:_B_B1 + 1])                  # (16, M1)
    z = bn_relu(conv3x3(y, B, _B_W2, 16, _ROW_MASK1, H1, W1, M1),
                prm_ref[B:B + 16, _B_G2:_B_G2 + 1],
                prm_ref[B:B + 16, _B_B2:_B_B2 + 1])                  # (16, M1)
    ds1 = maxpool(z, W1, s1_ref)                                     # (16, M2)

    # ---- bottleneck (1x1 conv with bias) ------------------------------------
    bottle = (jnp.dot(prm_ref[B:B + 16, _B_WB:_B_WB + 16], ds1,
                      preferred_element_type=f32)
              + prm_ref[B:B + 16, _B_BB:_B_BB + 1])                  # (16, M2)

    # ---- up[0]: upsample->conv1x1->relu == conv1x1+relu, then nearest 2x ----
    t1 = jnp.maximum(
        jnp.dot(prm_ref[A:A + 8, _A_WU0:_A_WU0 + 16], bottle + ds1,
                preferred_element_type=f32)
        + prm_ref[A:A + 8, _A_BU0:_A_BU0 + 1], 0.0)                  # (8, M2)
    du1 = jnp.dot(t1, u1_ref[...].astype(f32),
                  preferred_element_type=f32)                        # (8, M1)

    # ---- up[1]: conv1x1+relu at half res (its 2x upsample is folded into the
    # final head upsample matmul below -- exact for per-pixel ops) ------------
    t0 = jnp.maximum(
        jnp.dot(prm_ref[A:A + 8, _A_WU1:_A_WU1 + 8], du1 + ds0,
                preferred_element_type=f32)
        + prm_ref[A:A + 8, _A_BU1:_A_BU1 + 1], 0.0)                  # (8, M1)

    # ---- folded head: rows 0..2 = interSup2(sup + heas), row 3 = heatmap(sup)
    head = (jnp.dot(prm_ref[HD:HD + 4, _HD_W:_HD_W + 8], t0,
                    preferred_element_type=f32)
            + prm_ref[HD:HD + 4, _HD_B:_HD_B + 1])                   # (4, M1)
    full = jnp.dot(head, u0_ref[...].astype(f32),
                   preferred_element_type=f32)                       # (4, M0)

    # ---- lane-dense stores in (N, C, H*W) layout (host reshape is free) -----
    for n in range(N):
        sl = full[:, n * HW:(n + 1) * HW]                            # (4, HW)
        out_ref[n] = sl[0:3]
        heat_ref[n] = sl[3:4]


# ---------------------------------------------------------------------------
# Host-side constant builders.
# ---------------------------------------------------------------------------
def _conv_edge_masks(N, H, W):
    """(9, N*H*W) 0/1 masks: validity of tap (dy, dx) at every flattened lane."""
    M = N * H * W
    lane = np.arange(M)
    col = lane % W
    row = (lane // W) % H
    masks = np.zeros((9, M), np.float32)
    t = 0
    for dy in (-1, 0, 1):
        for dx in (-1, 0, 1):
            ok = ((col + dx >= 0) & (col + dx < W) &
                  (row + dy >= 0) & (row + dy < H))
            masks[t] = ok.astype(np.float32)
            t += 1
    return masks


def _pool_select(N, H, W):
    """0/1 (N*H*W, N*(H/2)*(W/2)) matrix selecting each 2x2 window's top-left lane."""
    Ho, Wo = H // 2, W // 2
    S = np.zeros((N * H * W, N * Ho * Wo), np.float32)
    src = ((np.arange(N)[:, None, None] * H + 2 * np.arange(Ho)[None, :, None]) * W
           + 2 * np.arange(Wo)[None, None, :]).reshape(-1)
    S[src, np.arange(N * Ho * Wo)] = 1.0
    return S


def _upsample_nearest(N, H, W):
    """0/1 (N*H*W, N*2H*2W) matrix implementing nearest-neighbor 2x upsample."""
    Ho, Wo = 2 * H, 2 * W
    U = np.zeros((N * H * W, N * Ho * Wo), np.float32)
    src = ((np.arange(N)[:, None, None] * H + (np.arange(Ho) // 2)[None, :, None]) * W
           + (np.arange(Wo) // 2)[None, None, :]).reshape(-1)
    U[src, np.arange(N * Ho * Wo)] = 1.0
    return U


# ---------------------------------------------------------------------------
# Parameters: PyTorch-equivalent shapes, then a one-time host prep/pack step.
# ---------------------------------------------------------------------------
def init_params(key):
    keys = iter(jax.random.split(key, 48))

    def nrm(shape, scale=0.1):
        return scale * jax.random.normal(next(keys), shape, jnp.float32)

    def conv(cin, cout, k):
        return {"w": nrm((cout, cin, k, k)), "b": nrm((cout,))}

    def bn(c):
        return {"g": 1.0 + nrm((c,)), "b": nrm((c,))}

    def down(cin, cout):
        return {"conv1": conv(cin, cout, 1), "bn1": bn(cout),
                "conv2": conv(cout, cout, 3), "bn2": bn(cout)}

    return {
        "down0": down(3, 8),
        "down1": down(8, 16),
        "up0": conv(16, 8, 1),
        "up1": conv(8, 8, 1),
        "bottleneck": conv(16, 16, 1),
        "interSup1": conv(8, 8, 1),
        "heatmap": conv(8, 1, 1),
        "heatSup": conv(1, 8, 1),
        "interSup2": conv(8, 3, 1),
    }


def prepare_params(p, N, H, W):
    """One-time host prep: pack every small parameter + the conv edge masks into
    one f32 slab (static row/col layout above), fold the four head 1x1 convs
    into a single (4, 8) affine map, and build the bf16 0/1 pool / upsample
    matrices.  Conv biases that feed a training-mode BatchNorm are dropped
    (the batch-mean subtraction cancels them exactly)."""
    assert H % 4 == 0 and W % 4 == 0
    M0, M1 = N * H * W, (N * H * W) // 4
    w_slab = max(M0, 256)
    slab = np.zeros((_SLAB_ROWS, w_slab), np.float32)

    def w1x1(c):                       # (Cout, Cin, 1, 1) -> (Cout, Cin)
        return np.asarray(c["w"])[:, :, 0, 0]

    def w3x3(c):                       # (Cout, Cin, 3, 3) -> (Cout, 9*Cin) tap-major
        w = np.asarray(c["w"]).transpose(0, 2, 3, 1)
        return w.reshape(w.shape[0], -1)

    d0, d1 = p["down0"], p["down1"]

    a = slab[_ROW_A:_ROW_A + 8]
    a[:, _A_W1:_A_W1 + 3] = w1x1(d0["conv1"])
    a[:, _A_G1] = np.asarray(d0["bn1"]["g"]); a[:, _A_B1] = np.asarray(d0["bn1"]["b"])
    a[:, _A_G2] = np.asarray(d0["bn2"]["g"]); a[:, _A_B2] = np.asarray(d0["bn2"]["b"])
    a[:, _A_W2:_A_W2 + 72] = w3x3(d0["conv2"])
    a[:, _A_WU0:_A_WU0 + 16] = w1x1(p["up0"]); a[:, _A_BU0] = np.asarray(p["up0"]["b"])
    a[:, _A_WU1:_A_WU1 + 8] = w1x1(p["up1"]);  a[:, _A_BU1] = np.asarray(p["up1"]["b"])

    b = slab[_ROW_B:_ROW_B + 16]
    b[:, _B_W1:_B_W1 + 8] = w1x1(d1["conv1"])
    b[:, _B_G1] = np.asarray(d1["bn1"]["g"]); b[:, _B_B1] = np.asarray(d1["bn1"]["b"])
    b[:, _B_G2] = np.asarray(d1["bn2"]["g"]); b[:, _B_B2] = np.asarray(d1["bn2"]["b"])
    b[:, _B_W2:_B_W2 + 144] = w3x3(d1["conv2"])
    b[:, _B_WB:_B_WB + 16] = w1x1(p["bottleneck"])
    b[:, _B_BB] = np.asarray(p["bottleneck"]["b"])

    # Fold interSup1 -> {heatmap, heatSup, interSup2} into one affine map:
    #   sup  = A du0 + a ; heat = Hm sup + hb ; heas = Hs heat + sb
    #   out  = Oo (sup + heas) + ob = Oo (I + Hs Hm) A du0 + const
    A_, a_ = w1x1(p["interSup1"]), np.asarray(p["interSup1"]["b"]).reshape(-1, 1)
    Hm, hb = w1x1(p["heatmap"]), np.asarray(p["heatmap"]["b"]).reshape(-1, 1)
    Hs, sb = w1x1(p["heatSup"]), np.asarray(p["heatSup"]["b"]).reshape(-1, 1)
    Oo, ob = w1x1(p["interSup2"]), np.asarray(p["interSup2"]["b"]).reshape(-1, 1)
    G = np.eye(8, dtype=np.float32) + Hs @ Hm
    w_out = Oo @ G @ A_
    b_out = Oo @ (G @ a_ + Hs @ hb + sb) + ob
    w_heat = Hm @ A_
    b_heat = Hm @ a_ + hb
    slab[_ROW_HEAD:_ROW_HEAD + 3, _HD_W:_HD_W + 8] = w_out
    slab[_ROW_HEAD + 3, _HD_W:_HD_W + 8] = w_heat[0]
    slab[_ROW_HEAD:_ROW_HEAD + 3, _HD_B] = b_out[:, 0]
    slab[_ROW_HEAD + 3, _HD_B] = b_heat[0, 0]

    slab[_ROW_MASK0:_ROW_MASK0 + 9, 0:M0] = _conv_edge_masks(N, H, W)
    slab[_ROW_MASK1:_ROW_MASK1 + 9, 0:M1] = _conv_edge_masks(N, H // 2, W // 2)

    bf16 = jnp.bfloat16   # 0/1 entries are exactly representable
    return {
        "slab": jnp.asarray(slab),
        "S0": jnp.asarray(_pool_select(N, H, W), dtype=bf16),
        "S1": jnp.asarray(_pool_select(N, H // 2, W // 2), dtype=bf16),
        "U1": jnp.asarray(_upsample_nearest(N, H // 4, W // 4), dtype=bf16),
        "U0": jnp.asarray(_upsample_nearest(N, H // 2, W // 2), dtype=bf16),
    }


# ---------------------------------------------------------------------------
# Forward pass (NCHW in / NCHW out) — a single pallas_call; the only wrapper
# ops are contiguous reshapes (free bitcasts), no transposes.
# ---------------------------------------------------------------------------
def hourglass_forward(x_nchw, kp):
    N, Cin, H, W = x_nchw.shape
    HW = H * W
    x_flat = x_nchw.reshape(N, Cin, HW)          # trailing-dim collapse: free

    vmem = pl.BlockSpec(memory_space=pltpu.MemorySpace.VMEM)
    out_flat, heat_flat = pl.pallas_call(
        functools.partial(_hourglass_kernel, N=N, H=H, W=W),
        out_shape=(jax.ShapeDtypeStruct((N, 3, HW), jnp.float32),
                   jax.ShapeDtypeStruct((N, 1, HW), jnp.float32)),
        in_specs=[vmem] * 6,
        out_specs=(vmem, vmem),
    )(x_flat, kp["slab"], kp["S0"], kp["S1"], kp["U1"], kp["U0"])

    return (out_flat.reshape(N, 3, H, W),        # free reshapes
            heat_flat.reshape(N, 1, H, W))


if __name__ == "__main__":
    key = jax.random.PRNGKey(0)
    pkey, xkey = jax.random.split(key)
    params = init_params(pkey)

    # Small input consistent with the module: batch=2, 3 channels, 16x16.
    N, H, W = 2, 16, 16
    kp = prepare_params(params, N, H, W)
    x = jax.random.normal(xkey, (N, 3, H, W), jnp.float32)

    fwd = jax.jit(hourglass_forward)
    out, heat = fwd(x, kp)
    jax.block_until_ready((out, heat))

    assert out.shape == (N, 3, H, W), out.shape
    assert heat.shape == (N, 1, H, W), heat.shape
    assert out.dtype == jnp.float32 and heat.dtype == jnp.float32
    assert bool(jnp.all(jnp.isfinite(out))) and bool(jnp.all(jnp.isfinite(heat)))
    print("KERNEL_OK")
</pallas_src>

<mosaic_0001>
module attributes {stable_mosaic.version = 11 : i64} {
  func.func @_hourglass_kernel(%arg0: memref<2x3x256xf32, #tpu.memory_space<vmem>>, %arg1: memref<48x512xf32, #tpu.memory_space<vmem>>, %arg2: memref<512x128xbf16, #tpu.memory_space<vmem>>, %arg3: memref<128x32xbf16, #tpu.memory_space<vmem>>, %arg4: memref<32x128xbf16, #tpu.memory_space<vmem>>, %arg5: memref<128x512xbf16, #tpu.memory_space<vmem>>, %arg6: memref<2x3x256xf32, #tpu.memory_space<vmem>>, %arg7: memref<2x1x256xf32, #tpu.memory_space<vmem>>) attributes {dimension_semantics = [], scalar_prefetch = 0 : i64, scratch_operands = 0 : i64, tpu.core_type = #tpu.core_type<tc>} {
    %c0 = arith.constant 0 : index
    %c0_0 = arith.constant 0 : index
    %c0_1 = arith.constant 0 : index
    %0 = vector.load %arg0[%c0, %c0_0, %c0_1] : memref<2x3x256xf32, #tpu.memory_space<vmem>>, vector<1x3x256xf32>
    %1 = vector.shape_cast %0 : vector<1x3x256xf32> to vector<3x256xf32>
    %c1 = arith.constant 1 : index
    %c0_2 = arith.constant 0 : index
    %c0_3 = arith.constant 0 : index
    %2 = vector.load %arg0[%c1, %c0_2, %c0_3] : memref<2x3x256xf32, #tpu.memory_space<vmem>>, vector<1x3x256xf32>
    %3 = vector.shape_cast %2 : vector<1x3x256xf32> to vector<3x256xf32>
    %4 = tpu.concatenate %1, %3 in 1 : vector<3x256xf32>, vector<3x256xf32> -> vector<3x512xf32>
    %c0_4 = arith.constant 0 : index
    %c0_5 = arith.constant 0 : index
    %5 = vector.load %arg1[%c0_4, %c0_5] : memref<48x512xf32, #tpu.memory_space<vmem>>, vector<8x3xf32>
    %cst = arith.constant dense<0.000000e+00> : vector<8x512xf32>
    %6 = tpu.matmul %5, %4, %cst {dimension_numbers = #tpu.dot_dimension_numbers<[1], [0], [0], [1], [0, 0, 1, 1], [], []>} : vector<8x3xf32>, vector<3x512xf32>, vector<8x512xf32> -> vector<8x512xf32>
    %c0_6 = arith.constant 0 : index
    %c3 = arith.constant 3 : index
    %7 = vector.load %arg1[%c0_6, %c3] : memref<48x512xf32, #tpu.memory_space<vmem>>, vector<8x1xf32>
    %c0_7 = arith.constant 0 : index
    %c4 = arith.constant 4 : index
    %8 = vector.load %arg1[%c0_7, %c4] : memref<48x512xf32, #tpu.memory_space<vmem>>, vector<8x1xf32>
    %9 = arith.mulf %6, %6 : vector<8x512xf32>
    %10 = tpu.concatenate %6, %9 in 0 : vector<8x512xf32>, vector<8x512xf32> -> vector<16x512xf32>
    %cst_8 = arith.constant dense<0.000000e+00> : vector<16xf32>
    %11 = vector.multi_reduction <add>, %10, %cst_8 [1] : vector<16x512xf32> to vector<16xf32>
    %12 = vector.shape_cast %11 : vector<16xf32> to vector<16x1xf32>
    %cst_9 = arith.constant 5.120000e+02 : f32
    %13 = vector.broadcast %cst_9 : f32 to vector<16x1xf32>
    %14 = arith.divf %12, %13 : vector<16x1xf32>
    %15 = vector.extract_strided_slice %14 {offsets = [0, 0], sizes = [8, 1], strides = [1, 1]} : vector<16x1xf32> to vector<8x1xf32>
    %16 = vector.extract_strided_slice %14 {offsets = [8, 0], sizes = [8, 1], strides = [1, 1]} : vector<16x1xf32> to vector<8x1xf32>
    %17 = arith.mulf %15, %15 : vector<8x1xf32>
    %18 = arith.subf %16, %17 : vector<8x1xf32>
    %cst_10 = arith.constant 9.99999974E-6 : f32
    %19 = vector.broadcast %cst_10 : f32 to vector<8x1xf32>
    %20 = arith.addf %18, %19 : vector<8x1xf32>
    %21 = math.rsqrt %20 : vector<8x1xf32>
    %22 = arith.mulf %7, %21 : vector<8x1xf32>
    %23 = vector.broadcast %22 : vector<8x1xf32> to vector<8x512xf32>
    %24 = arith.mulf %6, %23 : vector<8x512xf32>
    %25 = arith.mulf %15, %22 : vector<8x1xf32>
    %26 = arith.subf %8, %25 : vector<8x1xf32>
    %27 = vector.broadcast %26 : vector<8x1xf32> to vector<8x512xf32>
    %28 = arith.addf %24, %27 : vector<8x512xf32>
    %cst_11 = arith.constant 0.000000e+00 : f32
    %29 = vector.broadcast %cst_11 : f32 to vector<8x512xf32>
    %30 = arith.maximumf %28, %29 : vector<8x512xf32>
    %c0_12 = arith.constant 0 : index
    %c7 = arith.constant 7 : index
    %31 = vector.load %arg1[%c0_12, %c7] : memref<48x512xf32, #tpu.memory_space<vmem>>, vector<8x8xf32>
    %c28 = arith.constant 28 : index
    %c0_13 = arith.constant 0 : index
    %32 = vector.load %arg1[%c28, %c0_13] : memref<48x512xf32, #tpu.memory_space<vmem>>, vector<1x512xf32>
    %c17_i32 = arith.constant 17 : i32
    %33 = tpu.dynamic_rotate %30 by %c17_i32 dim 1 : vector<8x512xf32>, i32 -> vector<8x512xf32>
    %34 = vector.broadcast %32 : vector<1x512xf32> to vector<8x512xf32>
    %35 = arith.mulf %33, %34 : vector<8x512xf32>
    %cst_14 = arith.constant dense<0.000000e+00> : vector<8x512xf32>
    %36 = tpu.matmul %31, %35, %cst_14 {dimension_numbers = #tpu.dot_dimension_numbers<[1], [0], [0], [1], [0, 0, 1, 1], [], []>} : vector<8x8xf32>, vector<8x512xf32>, vector<8x512xf32> -> vector<8x512xf32>
    %c0_15 = arith.constant 0 : index
    %c15 = arith.constant 15 : index
    %37 = vector.load %arg1[%c0_15, %c15] : memref<48x512xf32, #tpu.memory_space<vmem>>, vector<8x8xf32>
    %c29 = arith.constant 29 : index
    %c0_16 = arith.constant 0 : index
    %38 = vector.load %arg1[%c29, %c0_16] : memref<48x512xf32, #tpu.memory_space<vmem>>, vector<1x512xf32>
    %c16_i32 = arith.constant 16 : i32
    %39 = tpu.dynamic_rotate %30 by %c16_i32 dim 1 : vector<8x512xf32>, i32 -> vector<8x512xf32>
    %40 = vector.broadcast %38 : vector<1x512xf32> to vector<8x512xf32>
    %41 = arith.mulf %39, %40 : vector<8x512xf32>
    %cst_17 = arith.constant dense<0.000000e+00> : vector<8x512xf32>
    %42 = tpu.matmul %37, %41, %cst_17 {dimension_numbers = #tpu.dot_dimension_numbers<[1], [0], [0], [1], [0, 0, 1, 1], [], []>} : vector<8x8xf32>, vector<8x512xf32>, vector<8x512xf32> -> vector<8x512xf32>
    %43 = arith.addf %36, %42 : vector<8x512xf32>
    %c0_18 = arith.constant 0 : index
    %c23 = arith.constant 23 : index
    %44 = vector.load %arg1[%c0_18, %c23] : memref<48x512xf32, #tpu.memory_space<vmem>>, vector<8x8xf32>
    %c30 = arith.constant 30 : index
    %c0_19 = arith.constant 0 : index
    %45 = vector.load %arg1[%c30, %c0_19] : memref<48x512xf32, #tpu.memory_space<vmem>>, vector<1x512xf32>
    %c15_i32 = arith.constant 15 : i32
    %46 = tpu.dynamic_rotate %30 by %c15_i32 dim 1 : vector<8x512xf32>, i32 -> vector<8x512xf32>
    %47 = vector.broadcast %45 : vector<1x512xf32> to vector<8x512xf32>
    %48 = arith.mulf %46, %47 : vector<8x512xf32>
    %cst_20 = arith.constant dense<0.000000e+00> : vector<8x512xf32>
    %49 = tpu.matmul %44, %48, %cst_20 {dimension_numbers = #tpu.dot_dimension_numbers<[1], [0], [0], [1], [0, 0, 1, 1], [], []>} : vector<8x8xf32>, vector<8x512xf32>, vector<8x512xf32> -> vector<8x512xf32>
    %50 = arith.addf %43, %49 : vector<8x512xf32>
    %c0_21 = arith.constant 0 : index
    %c31 = arith.constant 31 : index
    %51 = vector.load %arg1[%c0_21, %c31] : memref<48x512xf32, #tpu.memory_space<vmem>>, vector<8x8xf32>
    %c31_22 = arith.constant 31 : index
    %c0_23 = arith.constant 0 : index
    %52 = vector.load %arg1[%c31_22, %c0_23] : memref<48x512xf32, #tpu.memory_space<vmem>>, vector<1x512xf32>
    %c1_i32 = arith.constant 1 : i32
    %53 = tpu.dynamic_rotate %30 by %c1_i32 dim 1 : vector<8x512xf32>, i32 -> vector<8x512xf32>
    %54 = vector.broadcast %52 : vector<1x512xf32> to vector<8x512xf32>
    %55 = arith.mulf %53, %54 : vector<8x512xf32>
    %cst_24 = arith.constant dense<0.000000e+00> : vector<8x512xf32>
    %56 = tpu.matmul %51, %55, %cst_24 {dimension_numbers = #tpu.dot_dimension_numbers<[1], [0], [0], [1], [0, 0, 1, 1], [], []>} : vector<8x8xf32>, vector<8x512xf32>, vector<8x512xf32> -> vector<8x512xf32>
    %57 = arith.addf %50, %56 : vector<8x512xf32>
    %c0_25 = arith.constant 0 : index
    %c39 = arith.constant 39 : index
    %58 = vector.load %arg1[%c0_25, %c39] : memref<48x512xf32, #tpu.memory_space<vmem>>, vector<8x8xf32>
    %cst_26 = arith.constant dense<0.000000e+00> : vector<8x512xf32>
    %59 = tpu.matmul %58, %30, %cst_26 {dimension_numbers = #tpu.dot_dimension_numbers<[1], [0], [0], [1], [0, 0, 1, 1], [], []>} : vector<8x8xf32>, vector<8x512xf32>, vector<8x512xf32> -> vector<8x512xf32>
    %60 = arith.addf %57, %59 : vector<8x512xf32>
    %c0_27 = arith.constant 0 : index
    %c47 = arith.constant 47 : index
    %61 = vector.load %arg1[%c0_27, %c47] : memref<48x512xf32, #tpu.memory_space<vmem>>, vector<8x8xf32>
    %c33 = arith.constant 33 : index
    %c0_28 = arith.constant 0 : index
    %62 = vector.load %arg1[%c33, %c0_28] : memref<48x512xf32, #tpu.memory_space<vmem>>, vector<1x512xf32>
    %c511_i32 = arith.constant 511 : i32
    %63 = tpu.dynamic_rotate %30 by %c511_i32 dim 1 : vector<8x512xf32>, i32 -> vector<8x512xf32>
    %64 = vector.broadcast %62 : vector<1x512xf32> to vector<8x512xf32>
    %65 = arith.mulf %63, %64 : vector<8x512xf32>
    %cst_29 = arith.constant dense<0.000000e+00> : vector<8x512xf32>
    %66 = tpu.matmul %61, %65, %cst_29 {dimension_numbers = #tpu.dot_dimension_numbers<[1], [0], [0], [1], [0, 0, 1, 1], [], []>} : vector<8x8xf32>, vector<8x512xf32>, vector<8x512xf32> -> vector<8x512xf32>
    %67 = arith.addf %60, %66 : vector<8x512xf32>
    %c0_30 = arith.constant 0 : index
    %c55 = arith.constant 55 : index
    %68 = vector.load %arg1[%c0_30, %c55] : memref<48x512xf32, #tpu.memory_space<vmem>>, vector<8x8xf32>
    %c34 = arith.constant 34 : index
    %c0_31 = arith.constant 0 : index
    %69 = vector.load %arg1[%c34, %c0_31] : memref<48x512xf32, #tpu.memory_space<vmem>>, vector<1x512xf32>
    %c497_i32 = arith.constant 497 : i32
    %70 = tpu.dynamic_rotate %30 by %c497_i32 dim 1 : vector<8x512xf32>, i32 -> vector<8x512xf32>
    %71 = vector.broadcast %69 : vector<1x512xf32> to vector<8x512xf32>
    %72 = arith.mulf %70, %71 : vector<8x512xf32>
    %cst_32 = arith.constant dense<0.000000e+00> : vector<8x512xf32>
    %73 = tpu.matmul %68, %72, %cst_32 {dimension_numbers = #tpu.dot_dimension_numbers<[1], [0], [0], [1], [0, 0, 1, 1], [], []>} : vector<8x8xf32>, vector<8x512xf32>, vector<8x512xf32> -> vector<8x512xf32>
    %74 = arith.addf %67, %73 : vector<8x512xf32>
    %c0_33 = arith.constant 0 : index
    %c63 = arith.constant 63 : index
    %75 = vector.load %arg1[%c0_33, %c63] : memref<48x512xf32, #tpu.memory_space<vmem>>, vector<8x8xf32>
    %c35 = arith.constant 35 : index
    %c0_34 = arith.constant 0 : index
    %76 = vector.load %arg1[%c35, %c0_34] : memref<48x512xf32, #tpu.memory_space<vmem>>, vector<1x512xf32>
    %c496_i32 = arith.constant 496 : i32
    %77 = tpu.dynamic_rotate %30 by %c496_i32 dim 1 : vector<8x512xf32>, i32 -> vector<8x512xf32>
    %78 = vector.broadcast %76 : vector<1x512xf32> to vector<8x512xf32>
    %79 = arith.mulf %77, %78 : vector<8x512xf32>
    %cst_35 = arith.constant dense<0.000000e+00> : vector<8x512xf32>
    %80 = tpu.matmul %75, %79, %cst_35 {dimension_numbers = #tpu.dot_dimension_numbers<[1], [0], [0], [1], [0, 0, 1, 1], [], []>} : vector<8x8xf32>, vector<8x512xf32>, vector<8x512xf32> -> vector<8x512xf32>
    %81 = arith.addf %74, %80 : vector<8x512xf32>
    %c0_36 = arith.constant 0 : index
    %c71 = arith.constant 71 : index
    %82 = vector.load %arg1[%c0_36, %c71] : memref<48x512xf32, #tpu.memory_space<vmem>>, vector<8x8xf32>
    %c36 = arith.constant 36 : index
    %c0_37 = arith.constant 0 : index
    %83 = vector.load %arg1[%c36, %c0_37] : memref<48x512xf32, #tpu.memory_space<vmem>>, vector<1x512xf32>
    %c495_i32 = arith.constant 495 : i32
    %84 = tpu.dynamic_rotate %30 by %c495_i32 dim 1 : vector<8x512xf32>, i32 -> vector<8x512xf32>
    %85 = vector.broadcast %83 : vector<1x512xf32> to vector<8x512xf32>
    %86 = arith.mulf %84, %85 : vector<8x512xf32>
    %cst_38 = arith.constant dense<0.000000e+00> : vector<8x512xf32>
    %87 = tpu.matmul %82, %86, %cst_38 {dimension_numbers = #tpu.dot_dimension_numbers<[1], [0], [0], [1], [0, 0, 1, 1], [], []>} : vector<8x8xf32>, vector<8x512xf32>, vector<8x512xf32> -> vector<8x512xf32>
    %88 = arith.addf %81, %87 : vector<8x512xf32>
    %c0_39 = arith.constant 0 : index
    %c5 = arith.constant 5 : index
    %89 = vector.load %arg1[%c0_39, %c5] : memref<48x512xf32, #tpu.memory_space<vmem>>, vector<8x1xf32>
    %c0_40 = arith.constant 0 : index
    %c6 = arith.constant 6 : index
    %90 = vector.load %arg1[%c0_40, %c6] : memref<48x512xf32, #tpu.memory_space<vmem>>, vector<8x1xf32>
    %91 = arith.mulf %88, %88 : vector<8x512xf32>
    %92 = tpu.concatenate %88, %91 in 0 : vector<8x512xf32>, vector<8x512xf32> -> vector<16x512xf32>
    %cst_41 = arith.constant dense<0.000000e+00> : vector<16xf32>
    %93 = vector.multi_reduction <add>, %92, %cst_41 [1] : vector<16x512xf32> to vector<16xf32>
    %94 = vector.shape_cast %93 : vector<16xf32> to vector<16x1xf32>
    %cst_42 = arith.constant 5.120000e+02 : f32
    %95 = vector.broadcast %cst_42 : f32 to vector<16x1xf32>
    %96 = arith.divf %94, %95 : vector<16x1xf32>
    %97 = vector.extract_strided_slice %96 {offsets = [0, 0], sizes = [8, 1], strides = [1, 1]} : vector<16x1xf32> to vector<8x1xf32>
    %98 = vector.extract_strided_slice %96 {offsets = [8, 0], sizes = [8, 1], strides = [1, 1]} : vector<16x1xf32> to vector<8x1xf32>
    %99 = arith.mulf %97, %97 : vector<8x1xf32>
    %100 = arith.subf %98, %99 : vector<8x1xf32>
    %cst_43 = arith.constant 9.99999974E-6 : f32
    %101 = vector.broadcast %cst_43 : f32 to vector<8x1xf32>
    %102 = arith.addf %100, %101 : vector<8x1xf32>
    %103 = math.rsqrt %102 : vector<8x1xf32>
    %104 = arith.mulf %89, %103 : vector<8x1xf32>
    %105 = vector.broadcast %104 : vector<8x1xf32> to vector<8x512xf32>
    %106 = arith.mulf %88, %105 : vector<8x512xf32>
    %107 = arith.mulf %97, %104 : vector<8x1xf32>
    %108 = arith.subf %90, %107 : vector<8x1xf32>
    %109 = vector.broadcast %108 : vector<8x1xf32> to vector<8x512xf32>
    %110 = arith.addf %106, %109 : vector<8x512xf32>
    %cst_44 = arith.constant 0.000000e+00 : f32
    %111 = vector.broadcast %cst_44 : f32 to vector<8x512xf32>
    %112 = arith.maximumf %110, %111 : vector<8x512xf32>
    %c511_i32_45 = arith.constant 511 : i32
    %113 = tpu.dynamic_rotate %112 by %c511_i32_45 dim 1 : vector<8x512xf32>, i32 -> vector<8x512xf32>
    %114 = arith.maximumf %112, %113 : vector<8x512xf32>
    %c496_i32_46 = arith.constant 496 : i32
    %115 = tpu.dynamic_rotate %114 by %c496_i32_46 dim 1 : vector<8x512xf32>, i32 -> vector<8x512xf32>
    %116 = arith.maximumf %114, %115 : vector<8x512xf32>
    %c0_47 = arith.constant 0 : index
    %c0_48 = arith.constant 0 : index
    %117 = vector.load %arg2[%c0_47, %c0_48] : memref<512x128xbf16, #tpu.memory_space<vmem>>, vector<512x128xbf16>
    %118 = arith.extf %117 : vector<512x128xbf16> to vector<512x128xf32>
    %cst_49 = arith.constant dense<0.000000e+00> : vector<8x128xf32>
    %119 = tpu.matmul %116, %118, %cst_49 {dimension_numbers = #tpu.dot_dimension_numbers<[1], [0], [0], [1], [0, 0, 1, 1], [], []>} : vector<8x512xf32>, vector<512x128xf32>, vector<8x128xf32> -> vector<8x128xf32>
    %c8 = arith.constant 8 : index
    %c0_50 = arith.constant 0 : index
    %120 = vector.load %arg1[%c8, %c0_50] : memref<48x512xf32, #tpu.memory_space<vmem>>, vector<16x8xf32>
    %cst_51 = arith.constant dense<0.000000e+00> : vector<16x128xf32>
    %121 = tpu.matmul %120, %119, %cst_51 {dimension_numbers = #tpu.dot_dimension_numbers<[1], [0], [0], [1], [0, 0, 1, 1], [], []>} : vector<16x8xf32>, vector<8x128xf32>, vector<16x128xf32> -> vector<16x128xf32>
    %c8_52 = arith.constant 8 : index
    %c8_53 = arith.constant 8 : index
    %122 = vector.load %arg1[%c8_52, %c8_53] : memref<48x512xf32, #tpu.memory_space<vmem>>, vector<16x1xf32>
    %c8_54 = arith.constant 8 : index
    %c9 = arith.constant 9 : index
    %123 = vector.load %arg1[%c8_54, %c9] : memref<48x512xf32, #tpu.memory_space<vmem>>, vector<16x1xf32>
    %124 = arith.mulf %121, %121 : vector<16x128xf32>
    %125 = tpu.concatenate %121, %124 in 0 : vector<16x128xf32>, vector<16x128xf32> -> vector<32x128xf32>
    %cst_55 = arith.constant dense<0.000000e+00> : vector<32xf32>
    %126 = vector.multi_reduction <add>, %125, %cst_55 [1] : vector<32x128xf32> to vector<32xf32>
    %127 = vector.shape_cast %126 : vector<32xf32> to vector<32x1xf32>
    %cst_56 = arith.constant 1.280000e+02 : f32
    %128 = vector.broadcast %cst_56 : f32 to vector<32x1xf32>
    %129 = arith.divf %127, %128 : vector<32x1xf32>
    %130 = vector.extract_strided_slice %129 {offsets = [0, 0], sizes = [16, 1], strides = [1, 1]} : vector<32x1xf32> to vector<16x1xf32>
    %131 = vector.extract_strided_slice %129 {offsets = [16, 0], sizes = [16, 1], strides = [1, 1]} : vector<32x1xf32> to vector<16x1xf32>
    %132 = arith.mulf %130, %130 : vector<16x1xf32>
    %133 = arith.subf %131, %132 : vector<16x1xf32>
    %cst_57 = arith.constant 9.99999974E-6 : f32
    %134 = vector.broadcast %cst_57 : f32 to vector<16x1xf32>
    %135 = arith.addf %133, %134 : vector<16x1xf32>
    %136 = math.rsqrt %135 : vector<16x1xf32>
    %137 = arith.mulf %122, %136 : vector<16x1xf32>
    %138 = vector.broadcast %137 : vector<16x1xf32> to vector<16x128xf32>
    %139 = arith.mulf %121, %138 : vector<16x128xf32>
    %140 = arith.mulf %130, %137 : vector<16x1xf32>
    %141 = arith.subf %123, %140 : vector<16x1xf32>
    %142 = vector.broadcast %141 : vector<16x1xf32> to vector<16x128xf32>
    %143 = arith.addf %139, %142 : vector<16x128xf32>
    %cst_58 = arith.constant 0.000000e+00 : f32
    %144 = vector.broadcast %cst_58 : f32 to vector<16x128xf32>
    %145 = arith.maximumf %143, %144 : vector<16x128xf32>
    %c8_59 = arith.constant 8 : index
    %c12 = arith.constant 12 : index
    %146 = vector.load %arg1[%c8_59, %c12] : memref<48x512xf32, #tpu.memory_space<vmem>>, vector<16x16xf32>
    %c37 = arith.constant 37 : index
    %c0_60 = arith.constant 0 : index
    %147 = vector.load %arg1[%c37, %c0_60] : memref<48x512xf32, #tpu.memory_space<vmem>>, vector<1x128xf32>
    %c9_i32 = arith.constant 9 : i32
    %148 = tpu.dynamic_rotate %145 by %c9_i32 dim 1 : vector<16x128xf32>, i32 -> vector<16x128xf32>
    %149 = vector.broadcast %147 : vector<1x128xf32> to vector<16x128xf32>
    %150 = arith.mulf %148, %149 : vector<16x128xf32>
    %cst_61 = arith.constant dense<0.000000e+00> : vector<16x128xf32>
    %151 = tpu.matmul %146, %150, %cst_61 {dimension_numbers = #tpu.dot_dimension_numbers<[1], [0], [0], [1], [0, 0, 1, 1], [], []>} : vector<16x16xf32>, vector<16x128xf32>, vector<16x128xf32> -> vector<16x128xf32>
    %c8_62 = arith.constant 8 : index
    %c28_63 = arith.constant 28 : index
    %152 = vector.load %arg1[%c8_62, %c28_63] : memref<48x512xf32, #tpu.memory_space<vmem>>, vector<16x16xf32>
    %c38 = arith.constant 38 : index
    %c0_64 = arith.constant 0 : index
    %153 = vector.load %arg1[%c38, %c0_64] : memref<48x512xf32, #tpu.memory_space<vmem>>, vector<1x128xf32>
    %c8_i32 = arith.constant 8 : i32
    %154 = tpu.dynamic_rotate %145 by %c8_i32 dim 1 : vector<16x128xf32>, i32 -> vector<16x128xf32>
    %155 = vector.broadcast %153 : vector<1x128xf32> to vector<16x128xf32>
    %156 = arith.mulf %154, %155 : vector<16x128xf32>
    %cst_65 = arith.constant dense<0.000000e+00> : vector<16x128xf32>
    %157 = tpu.matmul %152, %156, %cst_65 {dimension_numbers = #tpu.dot_dimension_numbers<[1], [0], [0], [1], [0, 0, 1, 1], [], []>} : vector<16x16xf32>, vector<16x128xf32>, vector<16x128xf32> -> vector<16x128xf32>
    %158 = arith.addf %151, %157 : vector<16x128xf32>
    %c8_66 = arith.constant 8 : index
    %c44 = arith.constant 44 : index
    %159 = vector.load %arg1[%c8_66, %c44] : memref<48x512xf32, #tpu.memory_space<vmem>>, vector<16x16xf32>
    %c39_67 = arith.constant 39 : index
    %c0_68 = arith.constant 0 : index
    %160 = vector.load %arg1[%c39_67, %c0_68] : memref<48x512xf32, #tpu.memory_space<vmem>>, vector<1x128xf32>
    %c7_i32 = arith.constant 7 : i32
    %161 = tpu.dynamic_rotate %145 by %c7_i32 dim 1 : vector<16x128xf32>, i32 -> vector<16x128xf32>
    %162 = vector.broadcast %160 : vector<1x128xf32> to vector<16x128xf32>
    %163 = arith.mulf %161, %162 : vector<16x128xf32>
    %cst_69 = arith.constant dense<0.000000e+00> : vector<16x128xf32>
    %164 = tpu.matmul %159, %163, %cst_69 {dimension_numbers = #tpu.dot_dimension_numbers<[1], [0], [0], [1], [0, 0, 1, 1], [], []>} : vector<16x16xf32>, vector<16x128xf32>, vector<16x128xf32> -> vector<16x128xf32>
    %165 = arith.addf %158, %164 : vector<16x128xf32>
    %c8_70 = arith.constant 8 : index
    %c60 = arith.constant 60 : index
    %166 = vector.load %arg1[%c8_70, %c60] : memref<48x512xf32, #tpu.memory_space<vmem>>, vector<16x16xf32>
    %c40 = arith.constant 40 : index
    %c0_71 = arith.constant 0 : index
    %167 = vector.load %arg1[%c40, %c0_71] : memref<48x512xf32, #tpu.memory_space<vmem>>, vector<1x128xf32>
    %c1_i32_72 = arith.constant 1 : i32
    %168 = tpu.dynamic_rotate %145 by %c1_i32_72 dim 1 : vector<16x128xf32>, i32 -> vector<16x128xf32>
    %169 = vector.broadcast %167 : vector<1x128xf32> to vector<16x128xf32>
    %170 = arith.mulf %168, %169 : vector<16x128xf32>
    %cst_73 = arith.constant dense<0.000000e+00> : vector<16x128xf32>
    %171 = tpu.matmul %166, %170, %cst_73 {dimension_numbers = #tpu.dot_dimension_numbers<[1], [0], [0], [1], [0, 0, 1, 1], [], []>} : vector<16x16xf32>, vector<16x128xf32>, vector<16x128xf32> -> vector<16x128xf32>
    %172 = arith.addf %165, %171 : vector<16x128xf32>
    %c8_74 = arith.constant 8 : index
    %c76 = arith.constant 76 : index
    %173 = vector.load %arg1[%c8_74, %c76] : memref<48x512xf32, #tpu.memory_space<vmem>>, vector<16x16xf32>
    %cst_75 = arith.constant dense<0.000000e+00> : vector<16x128xf32>
    %174 = tpu.matmul %173, %145, %cst_75 {dimension_numbers = #tpu.dot_dimension_numbers<[1], [0], [0], [1], [0, 0, 1, 1], [], []>} : vector<16x16xf32>, vector<16x128xf32>, vector<16x128xf32> -> vector<16x128xf32>
    %175 = arith.addf %172, %174 : vector<16x128xf32>
    %c8_76 = arith.constant 8 : index
    %c92 = arith.constant 92 : index
    %176 = vector.load %arg1[%c8_76, %c92] : memref<48x512xf32, #tpu.memory_space<vmem>>, vector<16x16xf32>
    %c42 = arith.constant 42 : index
    %c0_77 = arith.constant 0 : index
    %177 = vector.load %arg1[%c42, %c0_77] : memref<48x512xf32, #tpu.memory_space<vmem>>, vector<1x128xf32>
    %c127_i32 = arith.constant 127 : i32
    %178 = tpu.dynamic_rotate %145 by %c127_i32 dim 1 : vector<16x128xf32>, i32 -> vector<16x128xf32>
    %179 = vector.broadcast %177 : vector<1x128xf32> to vector<16x128xf32>
    %180 = arith.mulf %178, %179 : vector<16x128xf32>
    %cst_78 = arith.constant dense<0.000000e+00> : vector<16x128xf32>
    %181 = tpu.matmul %176, %180, %cst_78 {dimension_numbers = #tpu.dot_dimension_numbers<[1], [0], [0], [1], [0, 0, 1, 1], [], []>} : vector<16x16xf32>, vector<16x128xf32>, vector<16x128xf32> -> vector<16x128xf32>
    %182 = arith.addf %175, %181 : vector<16x128xf32>
    %c8_79 = arith.constant 8 : index
    %c108 = arith.constant 108 : index
    %183 = vector.load %arg1[%c8_79, %c108] : memref<48x512xf32, #tpu.memory_space<vmem>>, vector<16x16xf32>
    %c43 = arith.constant 43 : index
    %c0_80 = arith.constant 0 : index
    %184 = vector.load %arg1[%c43, %c0_80] : memref<48x512xf32, #tpu.memory_space<vmem>>, vector<1x128xf32>
    %c121_i32 = arith.constant 121 : i32
    %185 = tpu.dynamic_rotate %145 by %c121_i32 dim 1 : vector<16x128xf32>, i32 -> vector<16x128xf32>
    %186 = vector.broadcast %184 : vector<1x128xf32> to vector<16x128xf32>
    %187 = arith.mulf %185, %186 : vector<16x128xf32>
    %cst_81 = arith.constant dense<0.000000e+00> : vector<16x128xf32>
    %188 = tpu.matmul %183, %187, %cst_81 {dimension_numbers = #tpu.dot_dimension_numbers<[1], [0], [0], [1], [0, 0, 1, 1], [], []>} : vector<16x16xf32>, vector<16x128xf32>, vector<16x128xf32> -> vector<16x128xf32>
    %189 = arith.addf %182, %188 : vector<16x128xf32>
    %c8_82 = arith.constant 8 : index
    %c124 = arith.constant 124 : index
    %190 = vector.load %arg1[%c8_82, %c124] : memref<48x512xf32, #tpu.memory_space<vmem>>, vector<16x16xf32>
    %c44_83 = arith.constant 44 : index
    %c0_84 = arith.constant 0 : index
    %191 = vector.load %arg1[%c44_83, %c0_84] : memref<48x512xf32, #tpu.memory_space<vmem>>, vector<1x128xf32>
    %c120_i32 = arith.constant 120 : i32
    %192 = tpu.dynamic_rotate %145 by %c120_i32 dim 1 : vector<16x128xf32>, i32 -> vector<16x128xf32>
    %193 = vector.broadcast %191 : vector<1x128xf32> to vector<16x128xf32>
    %194 = arith.mulf %192, %193 : vector<16x128xf32>
    %cst_85 = arith.constant dense<0.000000e+00> : vector<16x128xf32>
    %195 = tpu.matmul %190, %194, %cst_85 {dimension_numbers = #tpu.dot_dimension_numbers<[1], [0], [0], [1], [0, 0, 1, 1], [], []>} : vector<16x16xf32>, vector<16x128xf32>, vector<16x128xf32> -> vector<16x128xf32>
    %196 = arith.addf %189, %195 : vector<16x128xf32>
    %c8_86 = arith.constant 8 : index
    %c140 = arith.constant 140 : index
    %197 = vector.load %arg1[%c8_86, %c140] : memref<48x512xf32, #tpu.memory_space<vmem>>, vector<16x16xf32>
    %c45 = arith.constant 45 : index
    %c0_87 = arith.constant 0 : index
    %198 = vector.load %arg1[%c45, %c0_87] : memref<48x512xf32, #tpu.memory_space<vmem>>, vector<1x128xf32>
    %c119_i32 = arith.constant 119 : i32
    %199 = tpu.dynamic_rotate %145 by %c119_i32 dim 1 : vector<16x128xf32>, i32 -> vector<16x128xf32>
    %200 = vector.broadcast %198 : vector<1x128xf32> to vector<16x128xf32>
    %201 = arith.mulf %199, %200 : vector<16x128xf32>
    %cst_88 = arith.constant dense<0.000000e+00> : vector<16x128xf32>
    %202 = tpu.matmul %197, %201, %cst_88 {dimension_numbers = #tpu.dot_dimension_numbers<[1], [0], [0], [1], [0, 0, 1, 1], [], []>} : vector<16x16xf32>, vector<16x128xf32>, vector<16x128xf32> -> vector<16x128xf32>
    %203 = arith.addf %196, %202 : vector<16x128xf32>
    %c8_89 = arith.constant 8 : index
    %c10 = arith.constant 10 : index
    %204 = vector.load %arg1[%c8_89, %c10] : memref<48x512xf32, #tpu.memory_space<vmem>>, vector<16x1xf32>
    %c8_90 = arith.constant 8 : index
    %c11 = arith.constant 11 : index
    %205 = vector.load %arg1[%c8_90, %c11] : memref<48x512xf32, #tpu.memory_space<vmem>>, vector<16x1xf32>
    %206 = arith.mulf %203, %203 : vector<16x128xf32>
    %207 = tpu.concatenate %203, %206 in 0 : vector<16x128xf32>, vector<16x128xf32> -> vector<32x128xf32>
    %cst_91 = arith.constant dense<0.000000e+00> : vector<32xf32>
    %208 = vector.multi_reduction <add>, %207, %cst_91 [1] : vector<32x128xf32> to vector<32xf32>
    %209 = vector.shape_cast %208 : vector<32xf32> to vector<32x1xf32>
    %cst_92 = arith.constant 1.280000e+02 : f32
    %210 = vector.broadcast %cst_92 : f32 to vector<32x1xf32>
    %211 = arith.divf %209, %210 : vector<32x1xf32>
    %212 = vector.extract_strided_slice %211 {offsets = [0, 0], sizes = [16, 1], strides = [1, 1]} : vector<32x1xf32> to vector<16x1xf32>
    %213 = vector.extract_strided_slice %211 {offsets = [16, 0], sizes = [16, 1], strides = [1, 1]} : vector<32x1xf32> to vector<16x1xf32>
    %214 = arith.mulf %212, %212 : vector<16x1xf32>
    %215 = arith.subf %213, %214 : vector<16x1xf32>
    %cst_93 = arith.constant 9.99999974E-6 : f32
    %216 = vector.broadcast %cst_93 : f32 to vector<16x1xf32>
    %217 = arith.addf %215, %216 : vector<16x1xf32>
    %218 = math.rsqrt %217 : vector<16x1xf32>
    %219 = arith.mulf %204, %218 : vector<16x1xf32>
    %220 = vector.broadcast %219 : vector<16x1xf32> to vector<16x128xf32>
    %221 = arith.mulf %203, %220 : vector<16x128xf32>
    %222 = arith.mulf %212, %219 : vector<16x1xf32>
    %223 = arith.subf %205, %222 : vector<16x1xf32>
    %224 = vector.broadcast %223 : vector<16x1xf32> to vector<16x128xf32>
    %225 = arith.addf %221, %224 : vector<16x128xf32>
    %cst_94 = arith.constant 0.000000e+00 : f32
    %226 = vector.broadcast %cst_94 : f32 to vector<16x128xf32>
    %227 = arith.maximumf %225, %226 : vector<16x128xf32>
    %c127_i32_95 = arith.constant 127 : i32
    %228 = tpu.dynamic_rotate %227 by %c127_i32_95 dim 1 : vector<16x128xf32>, i32 -> vector<16x128xf32>
    %229 = arith.maximumf %227, %228 : vector<16x128xf32>
    %c120_i32_96 = arith.constant 120 : i32
    %230 = tpu.dynamic_rotate %229 by %c120_i32_96 dim 1 : vector<16x128xf32>, i32 -> vector<16x128xf32>
    %231 = arith.maximumf %229, %230 : vector<16x128xf32>
    %c0_97 = arith.constant 0 : index
    %c0_98 = arith.constant 0 : index
    %232 = vector.load %arg3[%c0_97, %c0_98] : memref<128x32xbf16, #tpu.memory_space<vmem>>, vector<128x32xbf16>
    %233 = arith.extf %232 : vector<128x32xbf16> to vector<128x32xf32>
    %cst_99 = arith.constant dense<0.000000e+00> : vector<16x32xf32>
    %234 = tpu.matmul %231, %233, %cst_99 {dimension_numbers = #tpu.dot_dimension_numbers<[1], [0], [0], [1], [0, 0, 1, 1], [], []>} : vector<16x128xf32>, vector<128x32xf32>, vector<16x32xf32> -> vector<16x32xf32>
    %c8_100 = arith.constant 8 : index
    %c156 = arith.constant 156 : index
    %235 = vector.load %arg1[%c8_100, %c156] : memref<48x512xf32, #tpu.memory_space<vmem>>, vector<16x16xf32>
    %cst_101 = arith.constant dense<0.000000e+00> : vector<16x32xf32>
    %236 = tpu.matmul %235, %234, %cst_101 {dimension_numbers = #tpu.dot_dimension_numbers<[1], [0], [0], [1], [0, 0, 1, 1], [], []>} : vector<16x16xf32>, vector<16x32xf32>, vector<16x32xf32> -> vector<16x32xf32>
    %c8_102 = arith.constant 8 : index
    %c172 = arith.constant 172 : index
    %237 = vector.load %arg1[%c8_102, %c172] : memref<48x512xf32, #tpu.memory_space<vmem>>, vector<16x1xf32>
    %238 = vector.broadcast %237 : vector<16x1xf32> to vector<16x32xf32>
    %239 = arith.addf %236, %238 : vector<16x32xf32>
    %c0_103 = arith.constant 0 : index
    %c79 = arith.constant 79 : index
    %240 = vector.load %arg1[%c0_103, %c79] : memref<48x512xf32, #tpu.memory_space<vmem>>, vector<8x16xf32>
    %241 = arith.addf %239, %234 : vector<16x32xf32>
    %cst_104 = arith.constant dense<0.000000e+00> : vector<8x32xf32>
    %242 = tpu.matmul %240, %241, %cst_104 {dimension_numbers = #tpu.dot_dimension_numbers<[1], [0], [0], [1], [0, 0, 1, 1], [], []>} : vector<8x16xf32>, vector<16x32xf32>, vector<8x32xf32> -> vector<8x32xf32>
    %c0_105 = arith.constant 0 : index
    %c95 = arith.constant 95 : index
    %243 = vector.load %arg1[%c0_105, %c95] : memref<48x512xf32, #tpu.memory_space<vmem>>, vector<8x1xf32>
    %244 = vector.broadcast %243 : vector<8x1xf32> to vector<8x32xf32>
    %245 = arith.addf %242, %244 : vector<8x32xf32>
    %cst_106 = arith.constant 0.000000e+00 : f32
    %246 = vector.broadcast %cst_106 : f32 to vector<8x32xf32>
    %247 = arith.maximumf %245, %246 : vector<8x32xf32>
    %c0_107 = arith.constant 0 : index
    %c0_108 = arith.constant 0 : index
    %248 = vector.load %arg4[%c0_107, %c0_108] : memref<32x128xbf16, #tpu.memory_space<vmem>>, vector<32x128xbf16>
    %249 = arith.extf %248 : vector<32x128xbf16> to vector<32x128xf32>
    %cst_109 = arith.constant dense<0.000000e+00> : vector<8x128xf32>
    %250 = tpu.matmul %247, %249, %cst_109 {dimension_numbers = #tpu.dot_dimension_numbers<[1], [0], [0], [1], [0, 0, 1, 1], [], []>} : vector<8x32xf32>, vector<32x128xf32>, vector<8x128xf32> -> vector<8x128xf32>
    %c0_110 = arith.constant 0 : index
    %c96 = arith.constant 96 : index
    %251 = vector.load %arg1[%c0_110, %c96] : memref<48x512xf32, #tpu.memory_space<vmem>>, vector<8x8xf32>
    %252 = arith.addf %250, %119 : vector<8x128xf32>
    %cst_111 = arith.constant dense<0.000000e+00> : vector<8x128xf32>
    %253 = tpu.matmul %251, %252, %cst_111 {dimension_numbers = #tpu.dot_dimension_numbers<[1], [0], [0], [1], [0, 0, 1, 1], [], []>} : vector<8x8xf32>, vector<8x128xf32>, vector<8x128xf32> -> vector<8x128xf32>
    %c0_112 = arith.constant 0 : index
    %c104 = arith.constant 104 : index
    %254 = vector.load %arg1[%c0_112, %c104] : memref<48x512xf32, #tpu.memory_space<vmem>>, vector<8x1xf32>
    %255 = vector.broadcast %254 : vector<8x1xf32> to vector<8x128xf32>
    %256 = arith.addf %253, %255 : vector<8x128xf32>
    %cst_113 = arith.constant 0.000000e+00 : f32
    %257 = vector.broadcast %cst_113 : f32 to vector<8x128xf32>
    %258 = arith.maximumf %256, %257 : vector<8x128xf32>
    %c24 = arith.constant 24 : index
    %c0_114 = arith.constant 0 : index
    %259 = vector.load %arg1[%c24, %c0_114] : memref<48x512xf32, #tpu.memory_space<vmem>>, vector<4x8xf32>
    %cst_115 = arith.constant dense<0.000000e+00> : vector<4x128xf32>
    %260 = tpu.matmul %259, %258, %cst_115 {dimension_numbers = #tpu.dot_dimension_numbers<[1], [0], [0], [1], [0, 0, 1, 1], [], []>} : vector<4x8xf32>, vector<8x128xf32>, vector<4x128xf32> -> vector<4x128xf32>
    %c24_116 = arith.constant 24 : index
    %c8_117 = arith.constant 8 : index
    %261 = vector.load %arg1[%c24_116, %c8_117] : memref<48x512xf32, #tpu.memory_space<vmem>>, vector<4x1xf32>
    %262 = vector.broadcast %261 : vector<4x1xf32> to vector<4x128xf32>
    %263 = arith.addf %260, %262 : vector<4x128xf32>
    %c0_118 = arith.constant 0 : index
    %c0_119 = arith.constant 0 : index
    %264 = vector.load %arg5[%c0_118, %c0_119] : memref<128x512xbf16, #tpu.memory_space<vmem>>, vector<128x512xbf16>
    %265 = arith.extf %264 : vector<128x512xbf16> to vector<128x512xf32>
    %cst_120 = arith.constant dense<0.000000e+00> : vector<4x512xf32>
    %266 = tpu.matmul %263, %265, %cst_120 {dimension_numbers = #tpu.dot_dimension_numbers<[1], [0], [0], [1], [0, 0, 1, 1], [], []>} : vector<4x128xf32>, vector<128x512xf32>, vector<4x512xf32> -> vector<4x512xf32>
    %267 = vector.extract_strided_slice %266 {offsets = [0, 0], sizes = [4, 256], strides = [1, 1]} : vector<4x512xf32> to vector<4x256xf32>
    %268 = vector.extract_strided_slice %267 {offsets = [0, 0], sizes = [3, 256], strides = [1, 1]} : vector<4x256xf32> to vector<3x256xf32>
    %c0_121 = arith.constant 0 : index
    %c0_122 = arith.constant 0 : index
    %c0_123 = arith.constant 0 : index
    %269 = vector.load %arg6[%c0_121, %c0_122, %c0_123] : memref<2x3x256xf32, #tpu.memory_space<vmem>>, vector<1x3x256xf32>
    %270 = vector.shape_cast %269 : vector<1x3x256xf32> to vector<3x256xf32>
    %271 = vector.shape_cast %268 : vector<3x256xf32> to vector<1x3x256xf32>
    tpu.vector_store %arg6[%c0_121, %c0_122, %c0_123], %271 {strides = array<i32>} : memref<2x3x256xf32, #tpu.memory_space<vmem>>, vector<1x3x256xf32>,
    %272 = vector.extract_strided_slice %267 {offsets = [3, 0], sizes = [1, 256], strides = [1, 1]} : vector<4x256xf32> to vector<1x256xf32>
    %c0_124 = arith.constant 0 : index
    %c0_125 = arith.constant 0 : index
    %c0_126 = arith.constant 0 : index
    %273 = vector.load %arg7[%c0_124, %c0_125, %c0_126] : memref<2x1x256xf32, #tpu.memory_space<vmem>>, vector<1x1x256xf32>
    %274 = vector.shape_cast %273 : vector<1x1x256xf32> to vector<1x256xf32>
    %275 = vector.shape_cast %272 : vector<1x256xf32> to vector<1x1x256xf32>
    tpu.vector_store %arg7[%c0_124, %c0_125, %c0_126], %275 {strides = array<i32>} : memref<2x1x256xf32, #tpu.memory_space<vmem>>, vector<1x1x256xf32>,
    %276 = vector.extract_strided_slice %266 {offsets = [0, 256], sizes = [4, 256], strides = [1, 1]} : vector<4x512xf32> to vector<4x256xf32>
    %277 = vector.extract_strided_slice %276 {offsets = [0, 0], sizes = [3, 256], strides = [1, 1]} : vector<4x256xf32> to vector<3x256xf32>
    %c1_127 = arith.constant 1 : index
    %c0_128 = arith.constant 0 : index
    %c0_129 = arith.constant 0 : index
    %278 = vector.load %arg6[%c1_127, %c0_128, %c0_129] : memref<2x3x256xf32, #tpu.memory_space<vmem>>, vector<1x3x256xf32>
    %279 = vector.shape_cast %278 : vector<1x3x256xf32> to vector<3x256xf32>
    %280 = vector.shape_cast %277 : vector<3x256xf32> to vector<1x3x256xf32>
    tpu.vector_store %arg6[%c1_127, %c0_128, %c0_129], %280 {strides = array<i32>} : memref<2x3x256xf32, #tpu.memory_space<vmem>>, vector<1x3x256xf32>,
    %281 = vector.extract_strided_slice %276 {offsets = [3, 0], sizes = [1, 256], strides = [1, 1]} : vector<4x256xf32> to vector<1x256xf32>
    %c1_130 = arith.constant 1 : index
    %c0_131 = arith.constant 0 : index
    %c0_132 = arith.constant 0 : index
    %282 = vector.load %arg7[%c1_130, %c0_131, %c0_132] : memref<2x1x256xf32, #tpu.memory_space<vmem>>, vector<1x1x256xf32>
    %283 = vector.shape_cast %282 : vector<1x1x256xf32> to vector<1x256xf32>
    %284 = vector.shape_cast %281 : vector<1x256xf32> to vector<1x1x256xf32>
    tpu.vector_store %arg7[%c1_130, %c0_131, %c0_132], %284 {strides = array<i32>} : memref<2x1x256xf32, #tpu.memory_space<vmem>>, vector<1x1x256xf32>,
    return
  }
}

</mosaic_0001>

<bundles_post_ra>
// kernel: hourglass_forward.1
= control target key start
LH: loop header
LB: loop body
LE: loop exit
PB: predicated region body
PF: predicated region fallthrough
CT: control target
= control target key end

     0   :  { %13 = vsyncpa [#allocation3], 0  ;;  %s5926_s0 = inlined_call_operand.vmem [shape: f32[2,3,256], index: 0, kind: input, shape index: {}]   ;;  %s5927_s1 = inlined_call_operand.vmem [shape: f32[48,512], index: 1, kind: input, shape index: {}]   ;;  %s5928_s2 = inlined_call_operand.hbm [shape: bf16[512,128], index: 2, kind: input, shape index: {}]   ;;  %s5929_s3 = inlined_call_operand.vmem [shape: bf16[128,32], index: 3, kind: input, shape index: {}]   ;;  %s5930_s4 = inlined_call_operand.hbm [shape: bf16[32,128], index: 4, kind: input, shape index: {}]   ;;  %s5931_s5 = inlined_call_operand.hbm [shape: bf16[128,512], index: 5, kind: input, shape index: {}]   ;;  %s5932_s6 = inlined_call_operand.vmem [shape: f32[2,3,256], index: 6, kind: output, shape index: {0}]   ;;  %s5933_s7 = inlined_call_operand.vmem [shape: f32[2,1,256], index: 7, kind: output, shape index: {1}]  }
   0x1   :  { %14 = vsyncpa [#allocation5], 0  ;;  %s5231_s24 = smov [#allocation4]   ;;  %s5232_s26 = smov [#allocation2]  }
   0x2   :  { %s38_s25 = sshll.u32 %s5231_s24, 4  ;;  %s24_s27 = sshll.u32 %s5232_s26, 4  ;;  %s39_s25 = int_to_ptr.vmem [resolvable:$true] %s38_s25  ;;  %s5322_s27 = int_to_ptr.vmem [resolvable:$true] %s24_s27 }
   0x3   :  { %s5161_s30 = scalar_lea.hbm %s5930_s4, 256 }
   0x4   :  { %p5162_p0 = scmp.ne.s32.totalorder %s5930_s4, %s5161_s30  ;;  %p5165_p1 = scmp.lt.u32.totalorder %s5161_s30, %s5930_s4 }
   0x6   :  { %p5167_p2 = pnand %p5165_p1, %p5162_p0 }
   0x8   :  { %5170 = shalt.err (!%p5167_p2)
}
   0x9   :  { %s5171_s12 = scalar_lea.vmem %s39_s25, 256  ;;  %p5176_p4 = scmp.lt.s32.totalorder %s39_s25, %s39_s25 }
   0xa   :  { %p5172_p3 = scmp.ne.s32.totalorder %s39_s25, %s5171_s12  ;;  %p5177_p5 = scmp.lt.s32.totalorder %s5171_s12, %s5171_s12 }
   0xc   :  { %p5178_p6 = por %p5177_p5, %p5176_p4 }
   0xe   :  { %p5179_p7 = pnand %p5178_p6, %p5172_p3 }
  0x10   :  { %5182 = shalt.err (!%p5179_p7)
}
  0x11   :  { %s5233_s13 = smov 64   ;;  %s5234_s14 = smov 4  }
  0x12   :  { %44 = dma.hbm_to_vmem [thread:$0]  %s5930_s4, 256, %s39_s25, [#allocation5], %s5233_s13, %s5233_s13, %s5234_s14  }
  0x13   :  { %s5183_s19 = scalar_lea.hbm %s5928_s2, 4096 }
  0x14   :  { %p5184_p8 = scmp.ne.s32.totalorder %s5928_s2, %s5183_s19  ;;  %p5187_p9 = scmp.lt.u32.totalorder %s5183_s19, %s5928_s2 }
  0x16   :  { %p5189_p10 = pnand %p5187_p9, %p5184_p8 }
  0x18   :  { %5192 = shalt.err (!%p5189_p10)
}
  0x19   :  { %s5193_s24 = scalar_lea.vmem %s5322_s27, 4096  ;;  %p5198_p12 = scmp.lt.s32.totalorder %s5322_s27, %s5322_s27 }
  0x1a   :  { %p5194_p11 = scmp.ne.s32.totalorder %s5322_s27, %s5193_s24  ;;  %p5199_p13 = scmp.lt.s32.totalorder %s5193_s24, %s5193_s24 }
  0x1c   :  { %p5200_p0 = por %p5199_p13, %p5198_p12 }
  0x1e   :  { %p5201_p1 = pnand %p5200_p0, %p5194_p11 }
  0x20   :  { %5204 = shalt.err (!%p5201_p1)
}
  0x21   :  { %30 = dma.hbm_to_vmem [thread:$0]  %s5928_s2, 4096, %s5322_s27, [#allocation3], %s5233_s13, %s5233_s13, %s5234_s14  }
  0x22   :  { %s5235_s26 = smov [#allocation6]   ;;  %s5205_s8 = scalar_lea.hbm %s5931_s5, 4096 }
  0x23   :  { %s50_s28 = sshll.u32 %s5235_s26, 4  ;;  %p5206_p2 = scmp.ne.s32.totalorder %s5931_s5, %s5205_s8  ;;  %s51_s28 = int_to_ptr.vmem [resolvable:$true] %s50_s28 }
  0x24   :  { %p5209_p3 = scmp.lt.u32.totalorder %s5205_s8, %s5931_s5 }
  0x26   :  { %p5211_p4 = pnand %p5209_p3, %p5206_p2 }
  0x28   :  { %5214 = shalt.err (!%p5211_p4)
}
  0x29   :  { %s5215_s15 = scalar_lea.vmem %s51_s28, 4096  ;;  %p5220_p6 = scmp.lt.s32.totalorder %s51_s28, %s51_s28 }
  0x2a   :  { %p5216_p5 = scmp.ne.s32.totalorder %s51_s28, %s5215_s15  ;;  %p5221_p7 = scmp.lt.s32.totalorder %s5215_s15, %s5215_s15 }
  0x2c   :  { %p5222_p8 = por %p5221_p7, %p5220_p6 }
  0x2e   :  { %p5223_p9 = pnand %p5222_p8, %p5216_p5 }
  0x30   :  { %5226 = shalt.err (!%p5223_p9)
}
  0x31   :  { %s5236_s2 = smov 256   ;;  %s5237_s27 = smov 16  }
  0x32   :  { %56 = dma.hbm_to_vmem [thread:$0]  %s5931_s5, 4096, %s51_s28, [#allocation5], %s5236_s2, %s5236_s2, %s5237_s27  }
  0x33   :  { %5227 = dma.done.wait [#allocation3], 4096  }
  0x34   :  { %5228 = vsyncadd [#allocation3], 4294963200 }
  0x35   :  { %5229 = dma.done.wait [#allocation5], 4352  }
  0x36   :  { %5230 = vsyncadd [#allocation5], 4294962944  ;;  %v5238_v0 = vmov 0.0   ;;  %v66_v1 = vld [vmem:[%s5926_s0] sm:$0x77]  ;;  %vm78_vm0 = vcmask 1042432   ;;  %v289_v50 = vlaneseq }
  0x37   :  { %151 = vmatprep.mubr.f32.mxu0 %v5238_v0  ;;  %222 = vmatprep.mubr.f32.mxu1 %v5238_v0  ;;  %v5376_v2 = vld [vmem:[%s5927_s1] sm:$0xff]  ;;  %v4164_v3 = vld [vmem:[%s5926_s0 + $0x8] sm:$0x77]  ;;  %v70_v4 = vcombine.high %v66_v1, %v66_v1  ;;  %vm74_vm1 = vcmask 23552   ;;  %v5239_v20 = vmov 3   ;;  %v5240_v28 = vmov 4  }
  0x38   :  { %v72_v5 = vcombine.high %v4164_v3, %v4164_v3  ;;  %5053 = vset.pattern.permute.xlu1 %v5239_v20  ;;  %5054 = vset.pattern.permute.xlu0 %v5240_v28  ;;  %s5241_s0 = smov 1   ;;  %s5242_s22 = smov 113   ;;  %v5464_v52 = vshrl.u32 %v289_v50, 7  ;;  %v5467_v53 = vand.u32 127, %v289_v50  ;;  %vm363_vm3 = vcmask 64512  }
  0x39   :  { %4165 = vmatprep.subr.msk.mxu0 %vm78_vm0, %v70_v4  ;;  %s5243_s23 = smov 121   ;;  %s5244_s24 = smov 105   ;;  %v4172_v55 = vld [vmem:[%s5927_s1 + $0x65] ss:$8 sm:$0xf]  ;;  %vm2457_vm11 = vcmask 130048  }
  0x3a   :  { %4168 = vmatprep.subr.msk.mxu1 %vm78_vm0, %v72_v5  ;;  %4166 = vmatpush1.msk.msra.mxu0 %vm78_vm0, %v66_v1  ;;  %s5245_s4 = smov 15   ;;  %s5246_s25 = smov 97   ;;  %v5470_v54 = vsub.s32 1, %v5464_v52  ;;  %vm331_vm2 = vcmp.lt.s32.totalorder %v5467_v53, 16  ;;  %v5480_v59 = vsub.s32 0, %v5464_v52  ;;  %v5491_v4 = vsub.s32 2, %v5464_v52 }
  0x3b   :  { %4169 = vmatpush1.msk.msra.mxu1 %vm78_vm0, %v4164_v3  ;;  %4167 = vmatmul.mubr.msk.f32.vlgmr.msra.gmra.mrb[0].mxu0 %vm74_vm1, %v5376_v2  ;;  %s5247_s26 = smov 17   ;;  %s5248_s28 = smov 81   ;;  %v5488_v3 = vsub.s32 3, %v5464_v52  ;;  %vm291_vm4 = vcmp.lt.s32.totalorder %v5467_v53, 17  ;;  %vm664_vm5 = vcmp.lt.s32.totalorder %v5467_v53, 15  ;;  %vm854_vm6 = vcmp.lt.s32.totalorder %v5467_v53, 1 }
  0x3c   :  { %4170 = vmatmul.mubr.msk.f32.vlgmr.msra.gmra.mrb[0].mxu1 %vm74_vm1, %v5376_v2  ;;  %430 = vmatprep.mubr.f32.mxu0 %v5238_v0  ;;  %s5249_s29 = smov 127   ;;  %s5250_s30 = smov 112   ;;  %v344_v58 = vrot.slane %v4172_v55, %v5470_v54  ;;  %v340_v1 = vrot.slane %v4172_v55, %v5480_v59  ;;  %vm1194_vm7 = vcmp.lt.s32.totalorder %v5467_v53, 127  ;;  %vm1384_vm8 = vcmp.lt.s32.totalorder %v5467_v53, 113 }
  0x3d   :  { %501 = vmatprep.mubr.f32.mxu1 %v5238_v0  ;;  %s5251_s8 = smov 65   ;;  %s5252_s9 = smov 89   ;;  %vm1574_vm9 = vcmp.lt.s32.totalorder %v5467_v53, 112  ;;  %vm1764_vm10 = vcmp.lt.s32.totalorder %v5467_v53, 111  ;;  %vm3096_vm12 = vcmask 31744   ;;  %vm5277_vm13 = vmmov 0  }
  0x3e   :  { %s5253_s10 = smov 111   ;;  %s5254_s11 = smov 73   ;;  %vm3633_vm14 = vcmask 261120   ;;  %vm4126_vm15 = vcmp.lt.s32.totalorder %v289_v50, 256 }
  0x3f   :  { %s5255_s12 = smov 57   ;;  %s5263_s15 = smov 116  }
  0x40   :  { %s5264_s2 = smov 7   ;;  %s5266_s13 = smov 68  }
  0x41   :  { %s5267_s16 = smov 52   ;;  %s5268_s17 = smov 36  }
  0x42   :  { %s5269_s18 = smov 20   ;;  %s5270_s19 = smov 120  }
 0x10e   :  { %v153_v6 = vpop.f32.mrb[0].mxu0 }
 0x10f   :  { %v224_v7 = vpop.f32.mrb[0].mxu1  ;;  %v229_v8 = vmul.f32 %v153_v6, %v153_v6  ;;  %v155_v9 = vpop.f32.mrb[1].mxu0 }
 0x110   :  { %v226_v10 = vpop.f32.mrb[1].mxu1  ;;  %v230_v11 = vmul.f32 %v155_v9, %v155_v9  ;;  %v233_v12 = vadd.f32 %v155_v9, %v153_v6  ;;  %v231_v13 = vmul.f32 %v224_v7, %v224_v7 }
 0x111   :  { %v232_v17 = vmul.f32 %v226_v10, %v226_v10 }
 0x112   :  { %v234_v14 = vadd.f32 %v233_v12, %v224_v7  ;;  %v238_v15 = vadd.f32 %v230_v11, %v229_v8 }
 0x114   :  { %v235_v16 = vadd.f32 %v234_v14, %v226_v10  ;;  %v239_v18 = vadd.f32 %v238_v15, %v231_v13 }
 0x116   :  { %236 = vadd.xlane.f32.xlu0 %v235_v16  ;;  %v240_v19 = vadd.f32 %v239_v18, %v232_v17  ;;  %v4171_v17 = vld [vmem:[%s5927_s1 + $0x64] ss:$8 sm:$0xf] }
 0x117   :  { %v308_v28 = vrot.slane %v4171_v17, %v5491_v4 }
 0x11a   :  { %241 = vadd.xlane.f32.xlu0 %v240_v19  ;;  %v304_v19 = vrot.slane %v4171_v17, %v5470_v54 }
 0x1a3   :  { %v237_v21 = vpop.xlane.xlu0 %236 }
 0x1a4   :  { %v244_v22 = vmul.f32 0.001953125, %v237_v21 }
 0x1a6   :  { %v246_v24 = vmul.f32 %v244_v22, %v244_v22 }
 0x1a7   :  { %v242_v23 = vpop.xlane.xlu0 %241 }
 0x1a8   :  { %v245_v25 = vmul.f32 0.001953125, %v242_v23 }
 0x1aa   :  { %v247_v26 = vsub.f32 %v245_v25, %v246_v24  ;;  %v300_v24 = vrot.slane %v4171_v17, %v5480_v59 }
 0x1ac   :  { %v248_v27 = vadd.f32 1e-05, %v247_v26 }
 0x1ae   :  { %5148 = vrsqrt.f32 %v248_v27 }
 0x1b8   :  { %v5149_v29 = vpop.eup %5148 }
 0x1b9   :  { %v250_v30 = vmul.f32 %v5149_v29, %v5376_v2  ;;  %v312_v29 = vrot.slane %v4171_v17, %v5488_v3 }
 0x1bb   :  { %v260_v31 = vmul.f32 %v250_v30, %v244_v22 }
 0x1bd   :  { %262 = vrot.lane.b32.xlu1 %v260_v31, %s5241_s0 }
 0x1c1   :  { %253 = vperm.xlu1 %5053, %v250_v30  }
 0x1c5   :  { %361 = vrot.lane.b32.xlu1 %v5376_v2, %s5242_s22 }
 0x1c9   :  { %508 = vrot.lane.b32.xlu1 %v5376_v2, %s5243_s23 }
 0x1cd   :  { %694 = vrot.lane.b32.xlu1 %v5376_v2, %s5244_s24 }
 0x22f   :  { %v263_v32 = vpop.permute.xlu1 %262 }
 0x230   :  { %v265_v33 = vsub.f32 %v5376_v2, %v263_v32  ;;  %v4177_v32 = vld [vmem:[%s5927_s1 + $0x66] ss:$8 sm:$0xf] }
 0x232   :  { %268 = vperm.xlu0 %5054, %v265_v33  }
 0x240   :  { %v254_v34 = vpop.permute.xlu1 %253 }
 0x241   :  { %v256_v35 = vmul.f32 %v254_v34, %v153_v6  ;;  %v257_v36 = vmul.f32 %v254_v34, %v155_v9  ;;  %v258_v38 = vmul.f32 %v254_v34, %v224_v7  ;;  %v259_v44 = vmul.f32 %v254_v34, %v226_v10 }
 0x242   :  { %v348_v9 = vrot.slane %v4172_v55, %v5491_v4  ;;  %v352_v10 = vrot.slane %v4172_v55, %v5488_v3 }
 0x244   :  { %v362_v48 = vpop.permute.xlu1 %361 }
 0x248   :  { %v5459_v49 = vpop.permute.xlu1 %508 }
 0x24c   :  { %v5461_v51 = vpop.permute.xlu1 %694 }
 0x2b1   :  { %v269_v37 = vpop.permute.xlu0 %268 }
 0x2b2   :  { %v271_v39 = vadd.f32 %v269_v37, %v256_v35  ;;  %v272_v40 = vadd.f32 %v269_v37, %v257_v36  ;;  %v273_v41 = vadd.f32 %v269_v37, %v258_v38  ;;  %v274_v45 = vadd.f32 %v269_v37, %v259_v44 }
 0x2b3   :  { %v677_v37 = vrot.slane %v4177_v32, %v5470_v54  ;;  %v673_v44 = vrot.slane %v4177_v32, %v5480_v59 }
 0x2b4   :  { %v5393_v42 = vmax.f32 %v271_v39, 0.0  ;;  %v5395_v43 = vmax.f32 %v272_v40, 0.0  ;;  %v5400_v46 = vmax.f32 %v273_v41, 0.0  ;;  %v5405_v47 = vmax.f32 %v274_v45, 0.0 }
 0x2b5   :  { %v685_v45 = vrot.slane %v4177_v32, %v5488_v3 }
 0x2b6   :  { %658 = vrot.lane.b32.xlu0 %v5395_v43, %s5245_s4  ;;  %323 = vrot.lane.b32.xlu1 %v5393_v42, %s5237_s27 }
 0x2ba   :  { %660 = vrot.lane.b32.xlu0 %v5400_v46, %s5245_s4  ;;  %325 = vrot.lane.b32.xlu1 %v5395_v43, %s5237_s27 }
 0x2be   :  { %846 = vrot.lane.b32.xlu0 %v5393_v42, %s5241_s0  ;;  %329 = vrot.lane.b32.xlu1 %v5405_v47, %s5237_s27 }
 0x2c2   :  { %852 = vrot.lane.b32.xlu0 %v5405_v47, %s5241_s0  ;;  %327 = vrot.lane.b32.xlu1 %v5400_v46, %s5237_s27  ;;  %s5265_s27 = smov 84  }
 0x2c6   :  { %884 = vrot.lane.b32.xlu0 %v5376_v2, %s5246_s25  ;;  %281 = vrot.lane.b32.xlu1 %v5393_v42, %s5247_s26 }
 0x2ca   :  { %1224 = vrot.lane.b32.xlu0 %v5376_v2, %s5248_s28  ;;  %283 = vrot.lane.b32.xlu1 %v5395_v43, %s5247_s26 }
 0x2ce   :  { %1188 = vrot.lane.b32.xlu0 %v5395_v43, %s5249_s29  ;;  %287 = vrot.lane.b32.xlu1 %v5405_v47, %s5247_s26 }
 0x2d2   :  { %1186 = vrot.lane.b32.xlu0 %v5393_v42, %s5249_s29  ;;  %285 = vrot.lane.b32.xlu1 %v5400_v46, %s5247_s26 }
 0x2d6   :  { %1380 = vrot.lane.b32.xlu0 %v5400_v46, %s5242_s22  ;;  %656 = vrot.lane.b32.xlu1 %v5393_v42, %s5245_s4 }
 0x2da   :  { %1382 = vrot.lane.b32.xlu0 %v5405_v47, %s5242_s22  ;;  %662 = vrot.lane.b32.xlu1 %v5405_v47, %s5245_s4 }
 0x2de   :  { %1568 = vrot.lane.b32.xlu0 %v5395_v43, %s5250_s30  ;;  %848 = vrot.lane.b32.xlu1 %v5395_v43, %s5241_s0 }
 0x2e2   :  { %1566 = vrot.lane.b32.xlu0 %v5393_v42, %s5250_s30  ;;  %850 = vrot.lane.b32.xlu1 %v5400_v46, %s5241_s0 }
 0x2e6   :  { %1604 = vrot.lane.b32.xlu0 %v5376_v2, %s5251_s8  ;;  %1034 = vrot.lane.b32.xlu1 %v5376_v2, %s5252_s9  ;;  %s5279_s8 = smov 32  }
 0x2ea   :  { %1760 = vrot.lane.b32.xlu0 %v5400_v46, %s5253_s10  ;;  %1414 = vrot.lane.b32.xlu1 %v5376_v2, %s5254_s11  ;;  %s5261_s11 = smov 100  }
 0x2ee   :  { %1762 = vrot.lane.b32.xlu0 %v5405_v47, %s5253_s10  ;;  %1190 = vrot.lane.b32.xlu1 %v5400_v46, %s5249_s29 }
 0x2f2   :  { %1192 = vrot.lane.b32.xlu1 %v5405_v47, %s5249_s29 }
 0x2f6   :  { %1378 = vrot.lane.b32.xlu1 %v5395_v43, %s5242_s22 }
 0x2fa   :  { %1376 = vrot.lane.b32.xlu1 %v5393_v42, %s5242_s22  ;;  %s5271_s22 = smov 119  }
 0x2fe   :  { %1570 = vrot.lane.b32.xlu1 %v5400_v46, %s5250_s30 }
 0x302   :  { %1572 = vrot.lane.b32.xlu1 %v5405_v47, %s5250_s30 }
 0x306   :  { %1758 = vrot.lane.b32.xlu1 %v5395_v43, %s5253_s10 }
 0x30a   :  { %1756 = vrot.lane.b32.xlu1 %v5393_v42, %s5253_s10  ;;  %s5260_s10 = smov 8  }
 0x30e   :  { %1794 = vrot.lane.b32.xlu1 %v5376_v2, %s5255_s12  ;;  %s5262_s12 = smov 9  }
 0x328   :  { %v5475_v56 = vpop.permute.xlu0 %658  ;;  %v324_v57 = vpop.permute.xlu1 %323 }
 0x32c   :  { %v5482_v60 = vpop.permute.xlu0 %660  ;;  %v326_v61 = vpop.permute.xlu1 %325 }
 0x32d   :  { %v334_v62 = vsel %vm331_vm2, %v324_v57, %v326_v61  ;;  %v666_v55 = vsel %vm664_vm5, %v5475_v56, %v5482_v60 }
 0x32e   :  { %v358_v63 = vmul.f32 %v344_v58, %v334_v62 }
 0x330   :  { %366 = vmatprep.subr.mxu0 %v358_v63  ;;  %v330_v5 = vpop.permute.xlu1 %329  ;;  %v5493_v6 = vpop.permute.xlu0 %846 }
 0x331   :  { %v335_v7 = vsel %vm331_vm2, %v330_v5, %v324_v57  ;;  %v4180_v57 = vld [vmem:[%s5927_s1 + $0x67] ss:$8 sm:$0xf] }
 0x332   :  { %v357_v8 = vmul.f32 %v340_v1, %v335_v7  ;;  %v867_v1 = vrot.slane %v4180_v57, %v5470_v54 }
 0x334   :  { %367 = vmatpush1.msra.mxu0 %v357_v8  ;;  %v328_v11 = vpop.permute.xlu1 %327  ;;  %v5505_v16 = vpop.permute.xlu0 %852 }
 0x335   :  { %v332_v12 = vsel %vm331_vm2, %v328_v11, %v330_v5  ;;  %v333_v13 = vsel %vm331_vm2, %v326_v61, %v328_v11  ;;  %4173 = vmatmul.mubr.msk.f32.vlgmr.msra.gmra.mrb[2].mxu0 %vm363_vm3, %v362_v48  ;;  %v863_v5 = vrot.slane %v4180_v57, %v5480_v59  ;;  %v858_v8 = vsel %vm854_vm6, %v5505_v16, %v5493_v6 }
 0x336   :  { %v359_v14 = vmul.f32 %v348_v9, %v333_v13  ;;  %v360_v15 = vmul.f32 %v352_v10, %v332_v12  ;;  %576 = vmatprep.mubr.f32.mxu0 %v5238_v0  ;;  %v871_v11 = vrot.slane %v4180_v57, %v5491_v4  ;;  %v875_v12 = vrot.slane %v4180_v57, %v5488_v3 }
 0x337   :  { %v880_v13 = vmul.f32 %v863_v5, %v858_v8 }
 0x338   :  { %437 = vmatprep.subr.mxu1 %v360_v15  ;;  %v282_v18 = vpop.permute.xlu1 %281  ;;  %v5514_v21 = vpop.permute.xlu0 %884 }
 0x339   :  { %438 = vmatpush1.msra.mxu1 %v359_v14 }
 0x33a   :  { %4174 = vmatmul.mubr.msk.f32.vlgmr.msra.gmra.mrb[2].mxu1 %vm363_vm3, %v362_v48  ;;  %v681_v48 = vrot.slane %v4177_v32, %v5491_v4 }
 0x33b   :  { %647 = vmatprep.mubr.f32.mxu1 %v5238_v0 }
 0x33c   :  { %v284_v20 = vpop.permute.xlu1 %283  ;;  %v5523_v30 = vpop.permute.xlu0 %1224 }
 0x33d   :  { %v294_v22 = vsel %vm291_vm4, %v282_v18, %v284_v20 }
 0x33e   :  { %v318_v23 = vmul.f32 %v304_v19, %v294_v22 }
 0x340   :  { %512 = vmatprep.subr.mxu0 %v318_v23  ;;  %v288_v25 = vpop.permute.xlu1 %287  ;;  %v5537_v39 = vpop.permute.xlu0 %1188 }
 0x341   :  { %v295_v26 = vsel %vm291_vm4, %v288_v25, %v282_v18 }
 0x342   :  { %v317_v27 = vmul.f32 %v300_v24, %v295_v26 }
 0x344   :  { %513 = vmatpush1.msra.mxu0 %v317_v27  ;;  %v286_v31 = vpop.permute.xlu1 %285  ;;  %v1187_v7 = vpop.permute.xlu0 %1186 }
 0x345   :  { %v292_v33 = vsel %vm291_vm4, %v286_v31, %v288_v25  ;;  %v293_v34 = vsel %vm291_vm4, %v284_v20, %v286_v31  ;;  %4175 = vmatmul.mubr.msk.f32.vlgmr.msra.gmra.mrb[2].mxu0 %vm363_vm3, %v5459_v49 }
 0x346   :  { %v319_v35 = vmul.f32 %v308_v28, %v293_v34  ;;  %v320_v36 = vmul.f32 %v312_v29, %v292_v33  ;;  %762 = vmatprep.mubr.f32.mxu0 %v5238_v0  ;;  %v4188_v29 = vld [vmem:[%s5927_s1 + $0x82] ss:$8 sm:$0xf] }
 0x348   :  { %583 = vmatprep.subr.mxu1 %v320_v36  ;;  %v657_v38 = vpop.permute.xlu1 %656 }
 0x349   :  { %v667_v40 = vsel %vm664_vm5, %v657_v38, %v5475_v56  ;;  %584 = vmatpush1.msra.mxu1 %v319_v35  ;;  %v692_v56 = vmul.f32 %v681_v48, %v666_v55  ;;  %v1397_v35 = vrot.slane %v4188_v29, %v5470_v54  ;;  %v4191_v48 = vld [vmem:[%s5927_s1 + $0x83] ss:$8 sm:$0xf] }
 0x34a   :  { %4176 = vmatmul.mubr.msk.f32.vlgmr.msra.gmra.mrb[2].mxu1 %vm363_vm3, %v5459_v49  ;;  %v691_v41 = vmul.f32 %v677_v37, %v667_v40  ;;  %v1393_v40 = vrot.slane %v4188_v29, %v5480_v59 }
 0x34b   :  { %833 = vmatprep.mubr.f32.mxu1 %v5238_v0 }
 0x34c   :  { %698 = vmatprep.subr.mxu0 %v691_v41  ;;  %v663_v49 = vpop.permute.xlu1 %662  ;;  %v1405_v41 = vrot.slane %v4188_v29, %v5488_v3 }
 0x34d   :  { %v665_v58 = vsel %vm664_vm5, %v5482_v60, %v663_v49  ;;  %v668_v61 = vsel %vm664_vm5, %v663_v49, %v657_v38 }
 0x34e   :  { %v690_v62 = vmul.f32 %v673_v44, %v668_v61  ;;  %v693_v63 = vmul.f32 %v685_v45, %v665_v58  ;;  %v1401_v44 = vrot.slane %v4188_v29, %v5491_v4 }
 0x350   :  { %699 = vmatpush1.msra.mxu0 %v690_v62  ;;  %769 = vmatprep.subr.mxu1 %v693_v63  ;;  %v849_v9 = vpop.permute.xlu1 %848  ;;  %v1587_v62 = vrot.slane %v4191_v48, %v5470_v54 }
 0x351   :  { %v857_v60 = vsel %vm854_vm6, %v5493_v6, %v849_v9  ;;  %4178 = vmatmul.mubr.msk.f32.vlgmr.msra.gmra.mrb[2].mxu0 %vm363_vm3, %v5461_v51  ;;  %770 = vmatpush1.msra.mxu1 %v692_v56  ;;  %v1381_v6 = vpop.permute.xlu0 %1380 }
 0x352   :  { %4179 = vmatmul.mubr.msk.f32.vlgmr.msra.gmra.mrb[2].mxu1 %vm363_vm3, %v5461_v51  ;;  %v881_v10 = vmul.f32 %v867_v1, %v857_v60  ;;  %952 = vmatprep.mubr.f32.mxu0 %v5238_v0  ;;  %v1583_v1 = vrot.slane %v4191_v48, %v5480_v59  ;;  %v1595_v60 = vrot.slane %v4191_v48, %v5488_v3 }
 0x353   :  { %1023 = vmatprep.mubr.f32.mxu1 %v5238_v0 }
 0x354   :  { %888 = vmatprep.subr.mxu0 %v881_v10  ;;  %v851_v14 = vpop.permute.xlu1 %850 }
 0x355   :  { %v855_v15 = vsel %vm854_vm6, %v851_v14, %v5505_v16  ;;  %v856_v51 = vsel %vm854_vm6, %v849_v9, %v851_v14  ;;  %889 = vmatpush1.msra.mxu0 %v880_v13  ;;  %v1383_v16 = vpop.permute.xlu0 %1382  ;;  %v1591_v9 = vrot.slane %v4191_v48, %v5491_v4  ;;  %v4194_v13 = vld [vmem:[%s5927_s1 + $0x84] ss:$8 sm:$0xf] }
 0x356   :  { %v882_v17 = vmul.f32 %v871_v11, %v856_v51  ;;  %1038 = vmatprep.subr.mxu0 %v5395_v43  ;;  %v883_v18 = vmul.f32 %v875_v12, %v855_v15  ;;  %v4185_v43 = vld [vmem:[%s5927_s1 + $0x81] ss:$8 sm:$0xf]  ;;  %v1385_v45 = vsel %vm1384_vm8, %v1381_v6, %v1383_v16 }
 0x357   :  { %v1211_v25 = vrot.slane %v4185_v43, %v5491_v4  ;;  %v1215_v26 = vrot.slane %v4185_v43, %v5488_v3  ;;  %v1412_v63 = vmul.f32 %v1401_v44, %v1385_v45 }
 0x358   :  { %959 = vmatprep.subr.mxu1 %v883_v18  ;;  %v1035_v19 = vpop.permute.xlu1 %1034 }
 0x359   :  { %4181 = vmatmul.mubr.msk.f32.vlgmr.msra.gmra.mrb[2].mxu0 %vm363_vm3, %v5514_v21  ;;  %960 = vmatpush1.msra.mxu1 %v882_v17  ;;  %v1569_v23 = vpop.permute.xlu0 %1568  ;;  %v1777_v17 = vrot.slane %v4194_v13, %v5470_v54 }
 0x35a   :  { %1039 = vmatpush1.msra.mxu0 %v5393_v42  ;;  %4182 = vmatmul.mubr.msk.f32.vlgmr.msra.gmra.mrb[2].mxu1 %vm363_vm3, %v5514_v21  ;;  %v1207_v42 = vrot.slane %v4185_v43, %v5470_v54  ;;  %v1203_v21 = vrot.slane %v4185_v43, %v5480_v59  ;;  %v1781_v54 = vrot.slane %v4194_v13, %v5491_v4 }
 0x35b   :  { %1109 = vmatprep.subr.mxu1 %v5405_v47  ;;  %1102 = vmatprep.mubr.f32.mxu0 %v5238_v0  ;;  %v1197_v47 = vsel %vm1194_vm7, %v1187_v7, %v5537_v39 }
 0x35c   :  { %1110 = vmatpush1.msra.mxu1 %v5400_v46  ;;  %v1415_v20 = vpop.permute.xlu1 %1414  ;;  %1173 = vmatprep.mubr.f32.mxu1 %v5238_v0  ;;  %v1220_v27 = vmul.f32 %v1203_v21, %v1197_v47 }
 0x35d   :  { %v1567_v36 = vpop.permute.xlu0 %1566 }
 0x35e   :  { %v1577_v56 = vsel %vm1574_vm9, %v1567_v36, %v1569_v23 }
 0x35f   :  { %v1600_v10 = vmul.f32 %v1583_v1, %v1577_v56 }
 0x360   :  { %v1191_v22 = vpop.permute.xlu1 %1190 }
 0x361   :  { %v1196_v24 = vsel %vm1194_vm7, %v5537_v39, %v1191_v22  ;;  %4183 = vmatmul.mubr.msk.f32.vlgmr.msra.gmra.mrb[2].mxu0 %vm363_vm3, %v1035_v19 }
 0x362   :  { %v1221_v46 = vmul.f32 %v1207_v42, %v1196_v24  ;;  %4184 = vmatmul.mubr.msk.f32.vlgmr.msra.gmra.mrb[2].mxu1 %vm363_vm3, %v1035_v19  ;;  %1292 = vmatprep.mubr.f32.mxu0 %v5238_v0  ;;  %v1785_v42 = vrot.slane %v4194_v13, %v5488_v3 }
 0x363   :  { %1363 = vmatprep.mubr.f32.mxu1 %v5238_v0 }
 0x364   :  { %1228 = vmatprep.subr.mxu0 %v1221_v46  ;;  %v1193_v28 = vpop.permute.xlu1 %1192 }
 0x365   :  { %v1195_v31 = vsel %vm1194_vm7, %v1191_v22, %v1193_v28  ;;  %v1198_v32 = vsel %vm1194_vm7, %v1193_v28, %v1187_v7  ;;  %1229 = vmatpush1.msra.mxu0 %v1220_v27 }
 0x366   :  { %v1222_v33 = vmul.f32 %v1211_v25, %v1195_v31  ;;  %v1223_v34 = vmul.f32 %v1215_v26, %v1198_v32 }
 0x368   :  { %1299 = vmatprep.subr.mxu1 %v1223_v34  ;;  %v1379_v37 = vpop.permute.xlu1 %1378 }
 0x369   :  { %v1386_v38 = vsel %vm1384_vm8, %v1379_v37, %v1381_v6  ;;  %4186 = vmatmul.mubr.msk.f32.vlgmr.msra.gmra.mrb[2].mxu0 %vm363_vm3, %v5523_v30  ;;  %1300 = vmatpush1.msra.mxu1 %v1222_v33 }
 0x36a   :  { %v1411_v39 = vmul.f32 %v1397_v35, %v1386_v38  ;;  %4187 = vmatmul.mubr.msk.f32.vlgmr.msra.gmra.mrb[2].mxu1 %vm363_vm3, %v5523_v30  ;;  %1482 = vmatprep.mubr.f32.mxu0 %v5238_v0  ;;  %v1605_v30 = vpop.permute.xlu0 %1604 }
 0x36b   :  { %1553 = vmatprep.mubr.f32.mxu1 %v5238_v0 }
 0x36c   :  { %1418 = vmatprep.subr.mxu0 %v1411_v39  ;;  %v1377_v55 = vpop.permute.xlu1 %1376  ;;  %v5256_v39 = vmov 5  }
 0x36d   :  { %v1387_v57 = vsel %vm1384_vm8, %v1377_v55, %v1379_v37  ;;  %v1388_v49 = vsel %vm1384_vm8, %v1383_v16, %v1377_v55  ;;  %5055 = vset.pattern.permute.xlu1 %v5256_v39 }
 0x36e   :  { %v1410_v58 = vmul.f32 %v1393_v40, %v1387_v57  ;;  %v1413_v61 = vmul.f32 %v1405_v41, %v1388_v49  ;;  %v1761_v11 = vpop.permute.xlu0 %1760  ;;  %v5257_v57 = vmov 6  }
 0x36f   :  { %5056 = vset.pattern.permute.xlu0 %v5257_v57 }
 0x370   :  { %1419 = vmatpush1.msra.mxu0 %v1410_v58  ;;  %1489 = vmatprep.subr.mxu1 %v1413_v61  ;;  %v1571_v5 = vpop.permute.xlu1 %1570 }
 0x371   :  { %v1576_v7 = vsel %vm1574_vm9, %v1569_v23, %v1571_v5  ;;  %4189 = vmatmul.mubr.msk.f32.vlgmr.msra.gmra.mrb[2].mxu0 %vm363_vm3, %v1415_v20  ;;  %1490 = vmatpush1.msra.mxu1 %v1412_v63 }
 0x372   :  { %v1601_v8 = vmul.f32 %v1587_v62, %v1576_v7  ;;  %4190 = vmatmul.mubr.msk.f32.vlgmr.msra.gmra.mrb[2].mxu1 %vm363_vm3, %v1415_v20  ;;  %1672 = vmatprep.mubr.f32.mxu0 %v5238_v0  ;;  %v1763_v19 = vpop.permute.xlu0 %1762  ;;  %v1773_v20 = vrot.slane %v4194_v13, %v5480_v59 }
 0x373   :  { %1743 = vmatprep.mubr.f32.mxu1 %v5238_v0  ;;  %v1765_v21 = vsel %vm1764_vm10, %v1761_v11, %v1763_v19 }
 0x374   :  { %1608 = vmatprep.subr.mxu0 %v1601_v8  ;;  %v1573_v12 = vpop.permute.xlu1 %1572  ;;  %v1792_v3 = vmul.f32 %v1781_v54, %v1765_v21  ;;  %v4409_v54 = vld [vmem:[#allocation2 + $0x88] sm:$0xff]   ;;  %v4402_v21 = vld [vmem:[#allocation2 + $0x50] sm:$0xff]  }
 0x375   :  { %v1575_v14 = vsel %vm1574_vm9, %v1571_v5, %v1573_v12  ;;  %v1578_v6 = vsel %vm1574_vm9, %v1573_v12, %v1567_v36  ;;  %1609 = vmatpush1.msra.mxu0 %v1600_v10 }
 0x376   :  { %v1602_v15 = vmul.f32 %v1591_v9, %v1575_v14  ;;  %v1603_v51 = vmul.f32 %v1595_v60, %v1578_v6 }
 0x378   :  { %1679 = vmatprep.subr.mxu1 %v1603_v51  ;;  %v1759_v18 = vpop.permute.xlu1 %1758  ;;  %v4400_v51 = vld [vmem:[#allocation2 + $0x40] sm:$0xff]  }
 0x379   :  { %v1766_v16 = vsel %vm1764_vm10, %v1759_v18, %v1761_v11  ;;  %4192 = vmatmul.mubr.msk.f32.vlgmr.msra.gmra.mrb[2].mxu0 %vm363_vm3, %v1605_v30  ;;  %1680 = vmatpush1.msra.mxu1 %v1602_v15 }
 0x37a   :  { %v1791_v43 = vmul.f32 %v1777_v17, %v1766_v16  ;;  %4193 = vmatmul.mubr.msk.f32.vlgmr.msra.gmra.mrb[2].mxu1 %vm363_vm3, %v1605_v30  ;;  %1862 = vmatprep.mubr.f32.mxu0 %v5238_v0  ;;  %v4416_v17 = vld [vmem:[#allocation2 + $0xc0] sm:$0xff]   ;;  %v4401_v16 = vld [vmem:[#allocation2 + $0x48] sm:$0xff]  }
 0x37b   :  { %1933 = vmatprep.mubr.f32.mxu1 %v5238_v0 }
 0x37c   :  { %1798 = vmatprep.subr.mxu0 %v1791_v43  ;;  %v1757_v47 = vpop.permute.xlu1 %1756  ;;  %v4417_v43 = vld [vmem:[#allocation2 + $0xc8] sm:$0xff]  }
 0x37d   :  { %v1767_v22 = vsel %vm1764_vm10, %v1757_v47, %v1759_v18  ;;  %v1768_v23 = vsel %vm1764_vm10, %v1763_v19, %v1757_v47  ;;  %v4226_v18 = vld [vmem:[#allocation2] sm:$0xff]   ;;  %v4418_v47 = vld [vmem:[#allocation2 + $0xd0] sm:$0xff]  }
 0x37e   :  { %v1790_v59 = vmul.f32 %v1773_v20, %v1767_v22  ;;  %v1793_v24 = vmul.f32 %v1785_v42, %v1768_v23  ;;  %v4408_v19 = vld [vmem:[#allocation2 + $0x80] sm:$0xff]   ;;  %v4393_v20 = vld [vmem:[#allocation2 + $0x8] sm:$0xff]   ;;  %v4394_v22 = vld [vmem:[#allocation2 + $0x10] sm:$0xff]  }
 0x37f   :  { %v4410_v23 = vld [vmem:[#allocation2 + $0x90] sm:$0xff]  }
 0x380   :  { %1799 = vmatpush1.msra.mxu0 %v1790_v59  ;;  %1869 = vmatprep.subr.mxu1 %v1793_v24  ;;  %v1795_v46 = vpop.permute.xlu1 %1794  ;;  %v4403_v59 = vld [vmem:[#allocation2 + $0x58] sm:$0xff]  }
 0x381   :  { %4195 = vmatmul.mubr.msk.f32.vlgmr.msra.gmra.mrb[2].mxu0 %vm363_vm3, %v1795_v46  ;;  %1870 = vmatpush1.msra.mxu1 %v1792_v3  ;;  %v4419_v24 = vld [vmem:[#allocation2 + $0xd8] sm:$0xff]  }
 0x382   :  { %4196 = vmatmul.mubr.msk.f32.vlgmr.msra.gmra.mrb[2].mxu1 %vm363_vm3, %v1795_v46  ;;  %4714 = vmatprep.subr.bf16.mxu0 %v4400_v51  ;;  %v4395_v3 = vld [vmem:[#allocation2 + $0x18] sm:$0xff]  }
 0x383   :  { %4746 = vmatprep.subr.bf16.mxu1 %v4416_v17  ;;  %4716 = vmatpush3.bf16.msra.mxu0 %v4226_v18  ;;  %v4411_v46 = vld [vmem:[#allocation2 + $0x98] sm:$0xff]  }
 0x384   :  { %4748 = vmatpush3.bf16.msra.mxu1 %v4408_v19  ;;  %4718 = vmatprep.subr.bf16.mxu0 %v4401_v16  ;;  %v5733_v19 = vld [vmem:[%s5927_s1 + $0x20] sm:$0xff] }
 0x385   :  { %4750 = vmatprep.subr.bf16.mxu1 %v4417_v43 }
 0x387   :  { %4720 = vmatpush3.bf16.msra.mxu0 %v4393_v20 }
 0x388   :  { %4752 = vmatpush3.bf16.msra.mxu1 %v4409_v54  ;;  %4722 = vmatprep.subr.bf16.mxu0 %v4402_v21 }
 0x389   :  { %4754 = vmatprep.subr.bf16.mxu1 %v4418_v47  ;;  %v5742_v47 = vld [vmem:[%s5927_s1 + $0x40] sm:$0xff] }
 0x38b   :  { %4724 = vmatpush3.bf16.msra.mxu0 %v4394_v22 }
 0x38c   :  { %4756 = vmatpush3.bf16.msra.mxu1 %v4410_v23  ;;  %4726 = vmatprep.subr.bf16.mxu0 %v4403_v59 }
 0x38d   :  { %4758 = vmatprep.subr.bf16.mxu1 %v4419_v24 }
 0x38f   :  { %4728 = vmatpush3.bf16.msra.mxu0 %v4395_v3  ;;  %v5258_v3 = vmov 8  }
 0x390   :  { %4760 = vmatpush3.bf16.msra.mxu1 %v4411_v46 }
 0x454   :  { %v1864_v4 = vpop.f32.mrb[2].mxu0 }
 0x455   :  { %v1944_v25 = vmul.f32 %v1864_v4, %v1864_v4  ;;  %v1866_v26 = vpop.f32.mrb[3].mxu0  ;;  %v1935_v27 = vpop.f32.mrb[2].mxu1 }
 0x456   :  { %v1945_v28 = vmul.f32 %v1866_v26, %v1866_v26  ;;  %v1948_v29 = vadd.f32 %v1866_v26, %v1864_v4  ;;  %v1937_v31 = vpop.f32.mrb[3].mxu1  ;;  %v1946_v32 = vmul.f32 %v1935_v27, %v1935_v27 }
 0x457   :  { %v1947_v36 = vmul.f32 %v1937_v31, %v1937_v31 }
 0x458   :  { %v1949_v33 = vadd.f32 %v1948_v29, %v1935_v27  ;;  %v1953_v34 = vadd.f32 %v1945_v28, %v1944_v25  ;;  %v4420_v25 = vld [vmem:[#allocation2 + $0xe0] sm:$0xff]   ;;  %v4405_v28 = vld [vmem:[#allocation2 + $0x68] sm:$0xff]  }
 0x459   :  { %4762 = vmatprep.subr.bf16.mxu1 %v4420_v25  ;;  %v4421_v29 = vld [vmem:[#allocation2 + $0xe8] sm:$0xff]  }
 0x45a   :  { %v1950_v35 = vadd.f32 %v1949_v33, %v1937_v31  ;;  %v1954_v37 = vadd.f32 %v1953_v34, %v1946_v32  ;;  %v4413_v32 = vld [vmem:[#allocation2 + $0xa8] sm:$0xff]   ;;  %v4406_v33 = vld [vmem:[#allocation2 + $0x70] sm:$0xff]  }
 0x45b   :  { %v4422_v34 = vld [vmem:[#allocation2 + $0xf0] sm:$0xff]  }
 0x45c   :  { %1951 = vadd.xlane.f32.xlu0 %v1950_v35  ;;  %v1955_v38 = vadd.f32 %v1954_v37, %v1947_v36  ;;  %v4398_v35 = vld [vmem:[#allocation2 + $0x30] sm:$0xff]  }
 0x45d   :  { %v4414_v36 = vld [vmem:[#allocation2 + $0xb0] sm:$0xff]  }
 0x45e   :  { %1956 = vadd.xlane.f32.xlu1 %v1955_v38 }
 0x4e9   :  { %v1952_v40 = vpop.xlane.xlu0 %1951 }
 0x4ea   :  { %v1958_v41 = vmul.f32 0.001953125, %v1952_v40  ;;  %v4407_v40 = vld [vmem:[#allocation2 + $0x78] sm:$0xff]  }
 0x4eb   :  { %v1957_v44 = vpop.xlane.xlu1 %1956 }
 0x4ec   :  { %v1960_v45 = vmul.f32 %v1958_v41, %v1958_v41  ;;  %v1959_v48 = vmul.f32 0.001953125, %v1957_v44  ;;  %v4399_v44 = vld [vmem:[#allocation2 + $0x38] sm:$0xff]  }
 0x4ee   :  { %v1961_v55 = vsub.f32 %v1959_v48, %v1960_v45  ;;  %v4415_v45 = vld [vmem:[#allocation2 + $0xb8] sm:$0xff]  }
 0x4f0   :  { %v1962_v30 = vadd.f32 1e-05, %v1961_v55 }
 0x4f2   :  { %5150 = vrsqrt.f32 %v1962_v30 }
 0x4fc   :  { %v5151_v49 = vpop.eup %5150 }
 0x4fd   :  { %v1964_v58 = vmul.f32 %v5151_v49, %v5376_v2 }
 0x4ff   :  { %1967 = vperm.xlu1 %5055, %v1964_v58   ;;  %v1974_v61 = vmul.f32 %v1964_v58, %v1958_v41  ;;  %v4423_v41 = vld [vmem:[#allocation2 + $0xf8] sm:$0xff]  }
 0x501   :  { %1976 = vrot.lane.b32.xlu0 %v1974_v61, %s5241_s0 }
 0x503   :  { %5077 = vset.pattern.permute.xlu1 %v5258_v3 }
 0x573   :  { %v1977_v62 = vpop.permute.xlu0 %1976 }
 0x574   :  { %v1979_v63 = vsub.f32 %v5376_v2, %v1977_v62 }
 0x576   :  { %1982 = vperm.xlu0 %5056, %v1979_v63  }
 0x57e   :  { %v1968_v1 = vpop.permute.xlu1 %1967 }
 0x57f   :  { %v1970_v56 = vmul.f32 %v1968_v1, %v1864_v4  ;;  %v1971_v5 = vmul.f32 %v1968_v1, %v1866_v26  ;;  %v1972_v7 = vmul.f32 %v1968_v1, %v1935_v27  ;;  %v1973_v8 = vmul.f32 %v1968_v1, %v1937_v31  ;;  %v4404_v4 = vld [vmem:[#allocation2 + $0x60] sm:$0xff]   ;;  %v4397_v31 = vld [vmem:[#allocation2 + $0x28] sm:$0xff]  }
 0x580   :  { %4730 = vmatprep.subr.bf16.mxu0 %v4404_v4  ;;  %v4396_v26 = vld [vmem:[#allocation2 + $0x20] sm:$0xff]  }
 0x581   :  { %v4412_v27 = vld [vmem:[#allocation2 + $0xa0] sm:$0xff]   ;;  %4732 = vmatpush3.bf16.msra.mxu0 %v4396_v26 }
 0x582   :  { %4764 = vmatpush3.bf16.msra.mxu1 %v4412_v27  ;;  %4734 = vmatprep.subr.bf16.mxu0 %v4405_v28 }
 0x583   :  { %4766 = vmatprep.subr.bf16.mxu1 %v4421_v29 }
 0x585   :  { %4736 = vmatpush3.bf16.msra.mxu0 %v4397_v31 }
 0x586   :  { %4768 = vmatpush3.bf16.msra.mxu1 %v4413_v32  ;;  %4738 = vmatprep.subr.bf16.mxu0 %v4406_v33 }
 0x587   :  { %4770 = vmatprep.subr.bf16.mxu1 %v4422_v34 }
 0x589   :  { %4740 = vmatpush3.bf16.msra.mxu0 %v4398_v35 }
 0x58a   :  { %4772 = vmatpush3.bf16.msra.mxu1 %v4414_v36  ;;  %4742 = vmatprep.subr.bf16.mxu0 %v4407_v40 }
 0x58b   :  { %4774 = vmatprep.subr.bf16.mxu1 %v4423_v41 }
 0x58d   :  { %4744 = vmatpush3.bf16.msra.mxu0 %v4399_v44 }
 0x58e   :  { %4776 = vmatpush3.bf16.msra.mxu1 %v4415_v45 }
 0x5f5   :  { %v1983_v9 = vpop.permute.xlu0 %1982 }
 0x5f6   :  { %v5682_v60 = vadd.f32 %v1983_v9, %v1970_v56  ;;  %v5684_v10 = vadd.f32 %v1983_v9, %v1971_v5  ;;  %v5686_v11 = vadd.f32 %v1983_v9, %v1972_v7  ;;  %v5688_v12 = vadd.f32 %v1983_v9, %v1973_v8 }
 0x5f8   :  { %v1989_v13 = vmax.f32 %v5682_v60, 0.0  ;;  %v1990_v14 = vmax.f32 %v5684_v10, 0.0  ;;  %v1991_v6 = vmax.f32 %v5686_v11, 0.0  ;;  %v1992_v15 = vmax.f32 %v5688_v12, 0.0 }
 0x5fa   :  { %v5057_v2 = vpack.i.bf16 %v1990_v14, %v1989_v13  ;;  %v5062_v42 = vpack.i.bf16 %v1992_v15, %v1991_v6 }
 0x5fc   :  { %5058 = vrot.lane.b32.xlu1 %v5057_v2, %s5249_s29 }
 0x600   :  { %5063 = vrot.lane.b32.xlu1 %v5062_v42, %s5249_s29 }
 0x66e   :  { %v5059_v37 = vpop.permute.xlu1 %5058 }
 0x66f   :  { %v5061_v38 = vunpack.i.h.bf16 %v5059_v37  ;;  %v5060_v39 = vunpack.i.l.bf16 %v5059_v37 }
 0x671   :  { %v2003_v55 = vsel %vm1194_vm7, %v5060_v39, %v5061_v38 }
 0x672   :  { %v5064_v48 = vpop.permute.xlu1 %5063  ;;  %v2005_v1 = vmax.f32 %v1989_v13, %v2003_v55 }
 0x673   :  { %v5066_v30 = vunpack.i.h.bf16 %v5064_v48  ;;  %v5065_v57 = vunpack.i.l.bf16 %v5064_v48 }
 0x675   :  { %v2001_v49 = vsel %vm1194_vm7, %v5065_v57, %v5066_v30  ;;  %v2002_v58 = vsel %vm1194_vm7, %v5061_v38, %v5065_v57  ;;  %v2004_v61 = vsel %vm1194_vm7, %v5066_v30, %v5060_v39  ;;  %v5259_v38 = vmov 9  }
 0x676   :  { %v2007_v62 = vmax.f32 %v1991_v6, %v2001_v49  ;;  %v2008_v63 = vmax.f32 %v1992_v15, %v2004_v61  ;;  %v2006_v56 = vmax.f32 %v1990_v14, %v2002_v58  ;;  %5078 = vset.pattern.permute.xlu0 %v5259_v38 }
 0x678   :  { %v5072_v5 = vpack.i.bf16 %v2008_v63, %v2007_v62  ;;  %v5067_v7 = vpack.i.bf16 %v2006_v56, %v2005_v1 }
 0x67a   :  { %5073 = vrot.lane.b32.xlu1 %v5072_v5, %s5250_s30  ;;  %5068 = vrot.lane.b32.xlu0 %v5067_v7, %s5250_s30 }
 0x6ec   :  { %v5074_v8 = vpop.permute.xlu1 %5073  ;;  %v5069_v9 = vpop.permute.xlu0 %5068 }
 0x6ed   :  { %v5076_v2 = vunpack.i.h.bf16 %v5074_v8  ;;  %v5075_v11 = vunpack.i.l.bf16 %v5074_v8  ;;  %v5071_v6 = vunpack.i.h.bf16 %v5069_v9  ;;  %v5070_v51 = vunpack.i.l.bf16 %v5069_v9 }
 0x6ef   :  { %v2017_v12 = vsel %vm1574_vm9, %v5075_v11, %v5076_v2  ;;  %v2019_v60 = vsel %vm1574_vm9, %v5070_v51, %v5071_v6  ;;  %v2018_v10 = vsel %vm1574_vm9, %v5071_v6, %v5075_v11  ;;  %v2020_v13 = vsel %vm1574_vm9, %v5076_v2, %v5070_v51  ;;  %v5788_v11 = vld [vmem:[%s5927_s1 + $0x28] sm:$0xff] }
 0x6f0   :  { %v2023_v14 = vmax.f32 %v2007_v62, %v2017_v12  ;;  %v2021_v15 = vmax.f32 %v2005_v1, %v2019_v60  ;;  %v2022_v17 = vmax.f32 %v2006_v56, %v2018_v10  ;;  %v2024_v18 = vmax.f32 %v2008_v63, %v2020_v13  ;;  %v5797_v6 = vld [vmem:[%s5927_s1 + $0x48] sm:$0xff]  ;;  %v2446_v12 = vld [vmem:[%s5927_s1 + $0x86] ss:$0 sm:$0xff] }
 0x6f2   :  { %2217 = vmatprep.mubr.f32.mxu0 %v2022_v17  ;;  %2287 = vmatprep.mubr.f32.mxu1 %v2024_v18 }
 0x6f3   :  { %2218 = vmatmul.mubr.f32.vlgmr.msra.gmra.mrb[4].mxu0 %v2021_v15  ;;  %2288 = vmatmul.mubr.f32.vlgmr.msra.gmra.mrb[4].mxu1 %v2023_v14 }
 0x6f4   :  { %4577 = vmatprep.mubr.msk.f32.mxu0 %vm363_vm3, %v5733_v19 }
 0x7c6   :  { %v4464_v16 = vpop.f32.mrb[4].mxu0  ;;  %v4499_v43 = vpop.f32.mrb[4].mxu1 }
 0x7c7   :  { %v4465_v53 = vpop.f32.mrb[5].mxu0  ;;  %v4500_v20 = vpop.f32.mrb[5].mxu1 }
 0x7c8   :  { %v4466_v42 = vadd.f32 %v4465_v53, %v4464_v16  ;;  %v4501_v54 = vadd.f32 %v4500_v20, %v4499_v43  ;;  %v2439_v16 = vld [vmem:[%s5927_s1 + $0x85] ss:$0 sm:$0xff] }
 0x7ca   :  { %v5737_v21 = vadd.f32 %v4501_v54, %v4466_v42 }
 0x7cc   :  { %4575 = vmatprep.subr.mxu0 %v5737_v21 }
 0x7cd   :  { %4576 = vmatpush3.msra.mxu0 %v5737_v21 }
 0x7ce   :  { %4578 = vmatmul.mubr.msk.f32.vlgmr.msra.gmra.mrb[6].mxu0 %vm363_vm3, %v5742_v47 }
 0x8a1   :  { %v4579_v22 = vpop.f32.mrb[6].mxu0 }
 0x8a2   :  { %v2367_v23 = vpop.f32.mrb[7].mxu0  ;;  %2380 = vadd.xlane.f32.xlu1 %v4579_v22  ;;  %v2377_v24 = vmul.f32 %v4579_v22, %v4579_v22 }
 0x8a3   :  { %2378 = vadd.xlane.f32.xlu0 %v2367_v23  ;;  %v2376_v59 = vmul.f32 %v2367_v23, %v2367_v23 }
 0x8a7   :  { %2382 = vadd.xlane.f32.xlu0 %v2376_v59  ;;  %v2620_v59 = vld [vmem:[%s5927_s1 + $0x87] ss:$0 sm:$0xff] }
 0x8ab   :  { %2384 = vadd.xlane.f32.xlu0 %v2377_v24 }
 0x92f   :  { %v2381_v25 = vpop.xlane.xlu1 %2380 }
 0x930   :  { %v2379_v46 = vpop.xlane.xlu0 %2378  ;;  %v2388_v28 = vmul.f32 0.0078125, %v2381_v25 }
 0x931   :  { %v2387_v4 = vmul.f32 0.0078125, %v2379_v46 }
 0x932   :  { %v2392_v33 = vmul.f32 %v2388_v28, %v2388_v28 }
 0x933   :  { %v2391_v27 = vmul.f32 %v2387_v4, %v2387_v4 }
 0x934   :  { %v2383_v26 = vpop.xlane.xlu0 %2382 }
 0x935   :  { %v2389_v29 = vmul.f32 0.0078125, %v2383_v26 }
 0x937   :  { %v2393_v31 = vsub.f32 %v2389_v29, %v2391_v27  ;;  %v2712_v29 = vld [vmem:[%s5927_s1 + $0xa0] ss:$0 sm:$0xff] }
 0x938   :  { %v2385_v32 = vpop.xlane.xlu0 %2384 }
 0x939   :  { %v2395_v34 = vadd.f32 1e-05, %v2393_v31  ;;  %v2390_v35 = vmul.f32 0.0078125, %v2385_v32 }
 0x93b   :  { %5152 = vrsqrt.f32 %v2395_v34  ;;  %v2394_v36 = vsub.f32 %v2390_v35, %v2392_v33 }
 0x93d   :  { %v2396_v37 = vadd.f32 1e-05, %v2394_v36 }
 0x93f   :  { %5154 = vrsqrt.f32 %v2396_v37 }
 0x945   :  { %v5153_v39 = vpop.eup %5152 }
 0x946   :  { %v2399_v40 = vmul.f32 %v5153_v39, %v5733_v19 }
 0x948   :  { %v2413_v41 = vmul.f32 %v2399_v40, %v2387_v4 }
 0x949   :  { %v5155_v44 = vpop.eup %5154 }
 0x94a   :  { %2417 = vrot.lane.b32.xlu1 %v2413_v41, %s5241_s0  ;;  %v2400_v45 = vmul.f32 %v5155_v44, %v5742_v47 }
 0x94c   :  { %v2414_v48 = vmul.f32 %v2400_v45, %v2388_v28 }
 0x94e   :  { %2403 = vperm.xlu1 %5077, %v2399_v40   ;;  %2419 = vrot.lane.b32.xlu0 %v2414_v48, %s5241_s0  ;;  %v2889_v40 = vld [vmem:[%s5927_s1 + $0xa2] ss:$0 sm:$0xff] }
 0x952   :  { %2408 = vperm.xlu1 %5077, %v2400_v45  }
 0x956   :  { %5079 = vset.pattern.permute.xlu1 %v5259_v38 }
 0x9bc   :  { %v2418_v55 = vpop.permute.xlu1 %2417 }
 0x9bd   :  { %v2423_v30 = vsub.f32 %v5733_v19, %v2418_v55 }
 0x9bf   :  { %2427 = vperm.xlu0 %5078, %v2423_v30  }
 0x9c0   :  { %v2420_v57 = vpop.permute.xlu0 %2419 }
 0x9c1   :  { %v2424_v49 = vsub.f32 %v5742_v47, %v2420_v57 }
 0x9c3   :  { %2432 = vperm.xlu1 %5079, %v2424_v49   ;;  %v2981_v49 = vld [vmem:[%s5927_s1 + $0xa3] ss:$0 sm:$0xff] }
 0x9cd   :  { %v2404_v58 = vpop.permute.xlu1 %2403 }
 0x9ce   :  { %v2411_v61 = vmul.f32 %v2404_v58, %v2367_v23 }
 0x9d1   :  { %v2409_v62 = vpop.permute.xlu1 %2408 }
 0x9d2   :  { %v2412_v56 = vmul.f32 %v4579_v22, %v2409_v62 }
 0xa3e   :  { %v2428_v63 = vpop.permute.xlu0 %2427 }
 0xa3f   :  { %v2435_v1 = vadd.f32 %v2428_v63, %v2411_v61 }
 0xa41   :  { %v2437_v5 = vmax.f32 %v2435_v1, 0.0 }
 0xa42   :  { %v2433_v7 = vpop.permute.xlu1 %2432 }
 0xa43   :  { %v2436_v8 = vadd.f32 %v2433_v7, %v2412_v56  ;;  %2447 = vrot.lane.b32.xlu1 %v2437_v5, %s5260_s10  ;;  %v3077_v7 = vld [vmem:[%s5927_s1 + $0xa4] ss:$0 sm:$0xff] }
 0xa45   :  { %v2438_v9 = vmax.f32 %v2436_v8, 0.0 }
 0xa47   :  { %2449 = vrot.lane.b32.xlu0 %v2438_v9, %s5260_s10  ;;  %2453 = vrot.lane.b32.xlu1 %v5733_v19, %s5261_s11  ;;  %v5757_v2 = vpack.c.bf16 %v2438_v9, %v2437_v5 }
 0xa4b   :  { %2455 = vrot.lane.b32.xlu0 %v5742_v47, %s5261_s11  ;;  %2442 = vrot.lane.b32.xlu1 %v2438_v9, %s5262_s12 }
 0xa4f   :  { %2440 = vrot.lane.b32.xlu0 %v2437_v5, %s5262_s12  ;;  %2537 = vrot.lane.b32.xlu1 %v5733_v19, %s5263_s15 }
 0xa53   :  { %2539 = vrot.lane.b32.xlu0 %v5742_v47, %s5263_s15  ;;  %2621 = vrot.lane.b32.xlu1 %v2437_v5, %s5264_s2 }
 0xa57   :  { %2623 = vrot.lane.b32.xlu0 %v2438_v9, %s5264_s2  ;;  %2627 = vrot.lane.b32.xlu1 %v5733_v19, %s5265_s27 }
 0xa5b   :  { %2629 = vrot.lane.b32.xlu0 %v5742_v47, %s5265_s27  ;;  %2713 = vrot.lane.b32.xlu1 %v2437_v5, %s5241_s0 }
 0xa5f   :  { %2715 = vrot.lane.b32.xlu0 %v2438_v9, %s5241_s0  ;;  %2719 = vrot.lane.b32.xlu1 %v5733_v19, %s5266_s13 }
 0xa63   :  { %2721 = vrot.lane.b32.xlu0 %v5742_v47, %s5266_s13  ;;  %2804 = vrot.lane.b32.xlu1 %v5733_v19, %s5267_s16 }
 0xa67   :  { %2806 = vrot.lane.b32.xlu0 %v5742_v47, %s5267_s16  ;;  %2896 = vrot.lane.b32.xlu1 %v5733_v19, %s5268_s17 }
 0xa6b   :  { %2892 = vrot.lane.b32.xlu0 %v2438_v9, %s5249_s29  ;;  %2890 = vrot.lane.b32.xlu1 %v2437_v5, %s5249_s29 }
 0xa6f   :  { %2898 = vrot.lane.b32.xlu0 %v5742_v47, %s5268_s17  ;;  %2988 = vrot.lane.b32.xlu1 %v5733_v19, %s5269_s18 }
 0xa73   :  { %2984 = vrot.lane.b32.xlu0 %v2438_v9, %s5243_s23  ;;  %2982 = vrot.lane.b32.xlu1 %v2437_v5, %s5243_s23 }
 0xa77   :  { %2990 = vrot.lane.b32.xlu0 %v5742_v47, %s5269_s18  ;;  %3088 = vrot.lane.b32.xlu1 %v5733_v19, %s5234_s14 }
 0xa7b   :  { %3080 = vrot.lane.b32.xlu0 %v2438_v9, %s5270_s19  ;;  %3078 = vrot.lane.b32.xlu1 %v2437_v5, %s5270_s19 }
 0xa7f   :  { %3090 = vrot.lane.b32.xlu0 %v5788_v11, %s5234_s14  ;;  %3092 = vrot.lane.b32.xlu1 %v5742_v47, %s5234_s14 }
 0xa83   :  { %3094 = vrot.lane.b32.xlu0 %v5797_v6, %s5234_s14  ;;  %3181 = vrot.lane.b32.xlu1 %v2437_v5, %s5271_s22 }
 0xa87   :  { %3183 = vrot.lane.b32.xlu0 %v2438_v9, %s5271_s22  ;;  %3187 = vrot.lane.b32.xlu1 %v5788_v11, %s5263_s15 }
 0xa8b   :  { %3189 = vrot.lane.b32.xlu0 %v5797_v6, %s5263_s15 }
 0xab5   :  { %v2448_v51 = vpop.permute.xlu1 %2447 }
 0xab6   :  { %v2451_v13 = vmul.f32 %v2448_v51, %v2446_v12 }
 0xab9   :  { %v2454_v60 = vpop.permute.xlu1 %2453  ;;  %v2450_v10 = vpop.permute.xlu0 %2449 }
 0xaba   :  { %v2452_v14 = vmul.f32 %v2450_v10, %v2446_v12  ;;  %4584 = vmatprep.mubr.msk.f32.mxu1 %vm2457_vm11, %v2454_v60 }
 0xabc   :  { %v4777_v15 = vpack.c.bf16 %v2452_v14, %v2451_v13 }
 0xabd   :  { %v2443_v17 = vpop.permute.xlu1 %2442  ;;  %v2456_v18 = vpop.permute.xlu0 %2455 }
 0xabe   :  { %4778 = vmatprep.subr.bf16.mxu1 %v4777_v15  ;;  %v2445_v20 = vmul.f32 %v2443_v17, %v2439_v16  ;;  %v3180_v17 = vld [vmem:[%s5927_s1 + $0xa5] ss:$0 sm:$0xff] }
 0xabf   :  { %4780 = vmatpush3.bf16.msra.mxu1 %v4777_v15 }
 0xac1   :  { %v2538_v43 = vpop.permute.xlu1 %2537  ;;  %v2441_v53 = vpop.permute.xlu0 %2440 }
 0xac2   :  { %v2444_v42 = vmul.f32 %v2441_v53, %v2439_v16  ;;  %4585 = vmatmul.mubr.msk.f32.vlgmr.msra.gmra.mrb[6].mxu1 %vm2457_vm11, %v2456_v18 }
 0xac3   :  { %4591 = vmatprep.mubr.msk.f32.mxu1 %vm2457_vm11, %v2538_v43 }
 0xac4   :  { %v4781_v54 = vpack.c.bf16 %v2445_v20, %v2444_v42 }
 0xac5   :  { %v2622_v22 = vpop.permute.xlu1 %2621  ;;  %v2540_v23 = vpop.permute.xlu0 %2539 }
 0xac6   :  { %4782 = vmatprep.subr.bf16.mxu1 %v4781_v54  ;;  %v2625_v4 = vmul.f32 %v2622_v22, %v2620_v59 }
 0xac7   :  { %4784 = vmatpush3.bf16.msra.mxu1 %v4781_v54 }
 0xac9   :  { %v2628_v24 = vpop.permute.xlu1 %2627  ;;  %v2624_v46 = vpop.permute.xlu0 %2623 }
 0xaca   :  { %v2626_v25 = vmul.f32 %v2624_v46, %v2620_v59  ;;  %4592 = vmatmul.mubr.msk.f32.vlgmr.msra.gmra.mrb[6].mxu1 %vm2457_vm11, %v2540_v23  ;;  %v5272_v46 = vmov 10  }
 0xacb   :  { %4598 = vmatprep.mubr.msk.f32.mxu1 %vm2457_vm11, %v2628_v24  ;;  %5081 = vset.pattern.permute.xlu0 %v5272_v46 }
 0xacc   :  { %v4785_v26 = vpack.c.bf16 %v2626_v25, %v2625_v4  ;;  %5080 = vset.pattern.permute.xlu1 %v5272_v46  ;;  %v5274_v46 = vmov 44  }
 0xacd   :  { %v2714_v27 = vpop.permute.xlu1 %2713  ;;  %v2630_v28 = vpop.permute.xlu0 %2629 }
 0xace   :  { %4786 = vmatprep.subr.bf16.mxu1 %v4785_v26  ;;  %v2717_v33 = vmul.f32 %v2714_v27, %v2712_v29 }
 0xacf   :  { %4788 = vmatpush3.bf16.msra.mxu1 %v4785_v26 }
 0xad1   :  { %v2720_v31 = vpop.permute.xlu1 %2719  ;;  %v2716_v32 = vpop.permute.xlu0 %2715 }
 0xad2   :  { %v2718_v34 = vmul.f32 %v2716_v32, %v2712_v29  ;;  %4599 = vmatmul.mubr.msk.f32.vlgmr.msra.gmra.mrb[6].mxu1 %vm2457_vm11, %v2630_v28 }
 0xad3   :  { %4605 = vmatprep.mubr.msk.f32.mxu1 %vm2457_vm11, %v2720_v31 }
 0xad4   :  { %v4789_v35 = vpack.c.bf16 %v2718_v34, %v2717_v33 }
 0xad5   :  { %v2805_v36 = vpop.permute.xlu1 %2804  ;;  %v2722_v37 = vpop.permute.xlu0 %2721 }
 0xad6   :  { %4790 = vmatprep.subr.bf16.mxu1 %v4789_v35 }
 0xad7   :  { %4792 = vmatpush3.bf16.msra.mxu1 %v4789_v35 }
 0xad8   :  { %4794 = vmatprep.subr.bf16.mxu1 %v5757_v2 }
 0xad9   :  { %v2897_v38 = vpop.permute.xlu1 %2896  ;;  %v2807_v39 = vpop.permute.xlu0 %2806 }
 0xada   :  { %4606 = vmatmul.mubr.msk.f32.vlgmr.msra.gmra.mrb[6].mxu1 %vm2457_vm11, %v2722_v37 }
 0xadb   :  { %4796 = vmatpush3.bf16.msra.mxu1 %v5757_v2  ;;  %4612 = vmatprep.mubr.msk.f32.mxu1 %vm2457_vm11, %v2805_v36 }
 0xadd   :  { %v2891_v41 = vpop.permute.xlu1 %2890  ;;  %v2893_v44 = vpop.permute.xlu0 %2892 }
 0xade   :  { %v2894_v45 = vmul.f32 %v2891_v41, %v2889_v40  ;;  %v2895_v48 = vmul.f32 %v2893_v44, %v2889_v40 }
 0xae0   :  { %v4797_v55 = vpack.c.bf16 %v2895_v48, %v2894_v45 }
 0xae1   :  { %v2989_v30 = vpop.permute.xlu1 %2988  ;;  %v2899_v57 = vpop.permute.xlu0 %2898 }
 0xae2   :  { %4613 = vmatmul.mubr.msk.f32.vlgmr.msra.gmra.mrb[6].mxu1 %vm2457_vm11, %v2807_v39  ;;  %4798 = vmatprep.subr.bf16.mxu1 %v4797_v55 }
 0xae3   :  { %4800 = vmatpush3.bf16.msra.mxu1 %v4797_v55  ;;  %4619 = vmatprep.mubr.msk.f32.mxu1 %vm2457_vm11, %v2897_v38  ;;  %v5273_v55 = vmov 11  }
 0xae5   :  { %v2983_v58 = vpop.permute.xlu1 %2982  ;;  %v2985_v61 = vpop.permute.xlu0 %2984 }
 0xae6   :  { %v2986_v62 = vmul.f32 %v2983_v58, %v2981_v49  ;;  %v2987_v63 = vmul.f32 %v2985_v61, %v2981_v49 }
 0xae8   :  { %v4801_v1 = vpack.c.bf16 %v2987_v63, %v2986_v62 }
 0xae9   :  { %v3089_v56 = vpop.permute.xlu1 %3088  ;;  %v2991_v5 = vpop.permute.xlu0 %2990 }
 0xaea   :  { %4620 = vmatmul.mubr.msk.f32.vlgmr.msra.gmra.mrb[6].mxu1 %vm2457_vm11, %v2899_v57  ;;  %4802 = vmatprep.subr.bf16.mxu1 %v4801_v1 }
 0xaeb   :  { %4804 = vmatpush3.bf16.msra.mxu1 %v4801_v1  ;;  %4626 = vmatprep.mubr.msk.f32.mxu1 %vm2457_vm11, %v2989_v30 }
 0xaed   :  { %v3079_v8 = vpop.permute.xlu1 %3078  ;;  %v3081_v9 = vpop.permute.xlu0 %3080 }
 0xaee   :  { %v3082_v2 = vmul.f32 %v3079_v8, %v3077_v7  ;;  %v3083_v51 = vmul.f32 %v3081_v9, %v3077_v7  ;;  %v4354_v8 = vld [vmem:[%s5929_s3] sm:$0xff]  }
 0xaef   :  { %4814 = vmatprep.subr.bf16.mxu0 %v4354_v8 }
 0xaf0   :  { %v4805_v12 = vpack.c.bf16 %v3083_v51, %v3082_v2  ;;  %4816 = vmatpush3.bf16.msra.mxu0 %v4354_v8  ;;  %v4425_v51 = vld [vmem:[%s5929_s3 + $0x10] sm:$0xff]  }
 0xaf1   :  { %v3093_v60 = vpop.permute.xlu1 %3092  ;;  %v3091_v10 = vpop.permute.xlu0 %3090  ;;  %v5118_v8 = vld [vmem:[#allocation6 + $0x64] ss:$16 sps:$4 sm:$0xff]  }
 0xaf2   :  { %v3097_v13 = vsel %vm3096_vm12, %v3089_v56, %v3091_v10  ;;  %4627 = vmatmul.mubr.msk.f32.vlgmr.msra.gmra.mrb[6].mxu1 %vm2457_vm11, %v2991_v5  ;;  %4806 = vmatprep.subr.bf16.mxu1 %v4805_v12  ;;  %v4427_v10 = vld [vmem:[%s5929_s3 + $0x20] sm:$0xff]  }
 0xaf3   :  { %4808 = vmatpush3.bf16.msra.mxu1 %v4805_v12  ;;  %4633 = vmatprep.mubr.msk.f32.mxu1 %vm2457_vm11, %v3097_v13  ;;  %v4428_v13 = vld [vmem:[%s5929_s3 + $0x28] sm:$0xff]  }
 0xaf5   :  { %v3182_v14 = vpop.permute.xlu1 %3181  ;;  %v3095_v15 = vpop.permute.xlu0 %3094 }
 0xaf6   :  { %v3098_v18 = vsel %vm3096_vm12, %v3093_v60, %v3095_v15  ;;  %v3185_v53 = vmul.f32 %v3182_v14, %v3180_v17  ;;  %v4426_v60 = vld [vmem:[%s5929_s3 + $0x18] sm:$0xff]   ;;  %v4429_v14 = vld [vmem:[%s5929_s3 + $0x30] sm:$0xff]  }
 0xaf7   :  { %v4430_v15 = vld [vmem:[%s5929_s3 + $0x38] sm:$0xff]  }
 0xaf9   :  { %v3184_v16 = vpop.permute.xlu0 %3183  ;;  %v3188_v43 = vpop.permute.xlu1 %3187 }
 0xafa   :  { %v3186_v20 = vmul.f32 %v3184_v16, %v3180_v17  ;;  %4634 = vmatmul.mubr.msk.f32.vlgmr.msra.gmra.mrb[6].mxu1 %vm2457_vm11, %v3098_v18 }
 0xafb   :  { %4640 = vmatprep.mubr.msk.f32.mxu1 %vm2457_vm11, %v3188_v43 }
 0xafc   :  { %v4809_v42 = vpack.c.bf16 %v3186_v20, %v3185_v53 }
 0xafd   :  { %v3190_v54 = vpop.permute.xlu0 %3189 }
 0xafe   :  { %4810 = vmatprep.subr.bf16.mxu1 %v4809_v42 }
 0xaff   :  { %4812 = vmatpush3.bf16.msra.mxu1 %v4809_v42 }
 0xb02   :  { %4641 = vmatmul.mubr.msk.f32.vlgmr.msra.gmra.mrb[6].mxu1 %vm2457_vm11, %v3190_v54 }
 0xb03   :  { %4689 = vmatprep.mubr.msk.f32.mxu1 %vm5277_vm13, %v5238_v0 }
 0xbd5   :  { %v4642_v22 = vpop.f32.mrb[6].mxu1 }
 0xbd6   :  { %3276 = vadd.xlane.f32.xlu0 %v4642_v22  ;;  %v3261_v23 = vpop.f32.mrb[7].mxu1  ;;  %v3273_v24 = vmul.f32 %v4642_v22, %v4642_v22 }
 0xbd7   :  { %3274 = vadd.xlane.f32.xlu1 %v3261_v23  ;;  %v3272_v59 = vmul.f32 %v3261_v23, %v3261_v23 }
 0xbda   :  { %3278 = vadd.xlane.f32.xlu0 %v3272_v59 }
 0xbdb   :  { %3280 = vadd.xlane.f32.xlu1 %v3273_v24 }
 0xc63   :  { %v3277_v4 = vpop.xlane.xlu0 %3276 }
 0xc64   :  { %v3275_v25 = vpop.xlane.xlu1 %3274  ;;  %v3283_v26 = vmul.f32 0.0078125, %v3277_v4  ;;  %v5160_v4 = vld [vmem:[%s5927_s1] sm:$0xff] }
 0xc65   :  { %v3282_v27 = vmul.f32 0.0078125, %v3275_v25 }
 0xc66   :  { %v3287_v33 = vmul.f32 %v3283_v26, %v3283_v26 }
 0xc67   :  { %v3286_v28 = vmul.f32 %v3282_v27, %v3282_v27  ;;  %v3279_v29 = vpop.xlane.xlu0 %3278 }
 0xc68   :  { %v3284_v31 = vmul.f32 0.0078125, %v3279_v29  ;;  %v3281_v32 = vpop.xlane.xlu1 %3280  ;;  %v5276_v29 = vmov 0.0|0.0  }
 0xc69   :  { %v3285_v34 = vmul.f32 0.0078125, %v3281_v32  ;;  %4849 = vmatprep.subr.bf16.mxu1 %v5276_v29 }
 0xc6a   :  { %v3288_v35 = vsub.f32 %v3284_v31, %v3286_v28 }
 0xc6b   :  { %v3289_v36 = vsub.f32 %v3285_v34, %v3287_v33 }
 0xc6c   :  { %v3290_v37 = vadd.f32 1e-05, %v3288_v35 }
 0xc6d   :  { %v3291_v38 = vadd.f32 1e-05, %v3289_v36 }
 0xc6e   :  { %5156 = vrsqrt.f32 %v3290_v37 }
 0xc6f   :  { %5158 = vrsqrt.f32 %v3291_v38 }
 0xc78   :  { %v5157_v39 = vpop.eup %5156 }
 0xc79   :  { %v5159_v40 = vpop.eup %5158  ;;  %v3294_v41 = vmul.f32 %v5157_v39, %v5733_v19 }
 0xc7a   :  { %v3295_v44 = vmul.f32 %v5159_v40, %v5742_v47 }
 0xc7b   :  { %v3308_v45 = vmul.f32 %v3294_v41, %v3282_v27 }
 0xc7c   :  { %v3309_v48 = vmul.f32 %v3295_v44, %v3283_v26 }
 0xc7d   :  { %3312 = vrot.lane.b32.xlu0 %v3308_v45, %s5241_s0 }
 0xc7e   :  { %3314 = vrot.lane.b32.xlu1 %v3309_v48, %s5241_s0 }
 0xc81   :  { %3303 = vperm.xlu0 %5081, %v3295_v44  }
 0xc82   :  { %3298 = vperm.xlu1 %5080, %v3294_v41   ;;  %v4431_v41 = vld [vmem:[#allocation4 + $0x8] sm:$0xff]  }
 0xc85   :  { %5093 = vset.pattern.permute.xlu0 %v5274_v46 }
 0xc86   :  { %5082 = vset.pattern.permute.xlu1 %v5273_v55 }
 0xcef   :  { %v3313_v30 = vpop.permute.xlu0 %3312 }
 0xcf0   :  { %v3318_v57 = vsub.f32 %v5733_v19, %v3313_v30  ;;  %v3315_v49 = vpop.permute.xlu1 %3314  ;;  %v4424_v19 = vld [vmem:[%s5929_s3 + $0x8] sm:$0xff]   ;;  %v5280_v30 = vmov 104  }
 0xcf1   :  { %v3319_v58 = vsub.f32 %v5742_v47, %v3315_v49  ;;  %4818 = vmatprep.subr.bf16.mxu0 %v4424_v19 }
 0xcf2   :  { %3322 = vperm.xlu1 %5082, %v3318_v57   ;;  %4820 = vmatpush3.bf16.msra.mxu0 %v4424_v19  ;;  %v5120_v19 = vld [vmem:[#allocation6 + $0x60] ss:$16 sps:$4 sm:$0xff]  }
 0xcf3   :  { %4822 = vmatprep.subr.bf16.mxu0 %v4425_v51 }
 0xcf6   :  { %3327 = vperm.xlu1 %5082, %v3319_v58   ;;  %4824 = vmatpush3.bf16.msra.mxu0 %v4425_v51  ;;  %v5132_v51 = vld [vmem:[#allocation6 + $0xa0] ss:$16 sps:$4 sm:$0xff]  }
 0xcf7   :  { %4826 = vmatprep.subr.bf16.mxu0 %v4426_v60 }
 0xcfa   :  { %4828 = vmatpush3.bf16.msra.mxu0 %v4426_v60  ;;  %5094 = vset.pattern.permute.xlu1 %v5274_v46  ;;  %v5138_v60 = vld [vmem:[#allocation6 + $0xc0] ss:$16 sps:$4 sm:$0xff]   ;;  %v5129_v46 = vld [vmem:[#allocation6 + $0x88] ss:$16 sps:$4 sm:$0xff]  }
 0xcfb   :  { %4830 = vmatprep.subr.bf16.mxu0 %v4427_v10 }
 0xcfe   :  { %4832 = vmatpush3.bf16.msra.mxu0 %v4427_v10  ;;  %v5142_v10 = vld [vmem:[#allocation6 + $0xe4] ss:$16 sps:$4 sm:$0xff]  }
 0xcff   :  { %4834 = vmatprep.subr.bf16.mxu0 %v4428_v13 }
 0xd00   :  { %v3304_v62 = vpop.permute.xlu0 %3303 }
 0xd01   :  { %v3299_v61 = vpop.permute.xlu1 %3298  ;;  %v3307_v56 = vmul.f32 %v4642_v22, %v3304_v62  ;;  %v3786_v62 = vld [vmem:[%s5927_s1 + $0x60] sm:$0xf] }
 0xd02   :  { %v3306_v1 = vmul.f32 %v3299_v61, %v3261_v23  ;;  %4836 = vmatpush3.bf16.msra.mxu0 %v4428_v13  ;;  %v5144_v13 = vld [vmem:[#allocation6 + $0xe0] ss:$16 sps:$4 sm:$0xff]  }
 0xd03   :  { %4838 = vmatprep.subr.bf16.mxu0 %v4429_v14 }
 0xd06   :  { %4840 = vmatpush3.bf16.msra.mxu0 %v4429_v14 }
 0xd07   :  { %4842 = vmatprep.subr.bf16.mxu0 %v4430_v15 }
 0xd0a   :  { %4844 = vmatpush3.bf16.msra.mxu0 %v4430_v15 }
 0xd71   :  { %v3323_v63 = vpop.permute.xlu1 %3322 }
 0xd72   :  { %v3330_v5 = vadd.f32 %v3323_v63, %v3306_v1  ;;  %v5100_v63 = vld [vmem:[#allocation6 + $0x4] ss:$16 sps:$4 sm:$0xff]   ;;  %v5102_v1 = vld [vmem:[#allocation6] ss:$16 sps:$4 sm:$0xff]  }
 0xd74   :  { %v3332_v47 = vmax.f32 %v3330_v5, 0.0  ;;  %v5112_v5 = vld [vmem:[#allocation6 + $0x44] ss:$16 sps:$4 sm:$0xff]  }
 0xd75   :  { %v3328_v7 = vpop.permute.xlu1 %3327 }
 0xd76   :  { %v3331_v9 = vadd.f32 %v3328_v7, %v3307_v56  ;;  %v5106_v56 = vld [vmem:[#allocation6 + $0x24] ss:$16 sps:$4 sm:$0xff]   ;;  %v5114_v7 = vld [vmem:[#allocation6 + $0x40] ss:$16 sps:$4 sm:$0xff]  }
 0xd78   :  { %v3333_v2 = vmax.f32 %v3331_v9, 0.0  ;;  %v5124_v9 = vld [vmem:[#allocation6 + $0x84] ss:$16 sps:$4 sm:$0xff]  }
 0xd7a   :  { %v5083_v12 = vpack.i.bf16 %v3333_v2, %v3332_v47 }
 0xd7c   :  { %5084 = vrot.lane.b32.xlu0 %v5083_v12, %s5249_s29  ;;  %v5136_v12 = vld [vmem:[#allocation6 + $0xc4] ss:$16 sps:$4 sm:$0xff]  }
 0xd80   :  { %3461 = vrot.lane.b32.xlu0 %v5788_v11, %s5261_s11 }
 0xd84   :  { %3454 = vperm.xlu0 %5093, %v5788_v11   ;;  %v4386_v11 = vld [vmem:[#allocation4] sm:$0xff]  }
 0xdee   :  { %v5085_v17 = vpop.permute.xlu0 %5084 }
 0xdef   :  { %v5087_v18 = vunpack.i.h.bf16 %v5085_v17  ;;  %v5086_v16 = vunpack.i.l.bf16 %v5085_v17 }
 0xdf1   :  { %v3339_v43 = vmax.f32 %v3333_v2, %v5087_v18  ;;  %v3338_v53 = vmax.f32 %v3332_v47, %v5086_v16  ;;  %v5126_v47 = vld [vmem:[#allocation6 + $0x80] ss:$16 sps:$4 sm:$0xff]   ;;  %v5130_v2 = vld [vmem:[#allocation6 + $0xa4] ss:$16 sps:$4 sm:$0xff]   ;;  %v5103_v16 = vld [vmem:[#allocation6 + $0xc] ss:$16 sps:$4 sm:$0xff]  }
 0xdf2   :  { %v3462_v24 = vpop.permute.xlu0 %3461 }
 0xdf3   :  { %v5088_v20 = vpack.i.bf16 %v3339_v43, %v3338_v53 }
 0xdf5   :  { %5089 = vrot.lane.b32.xlu1 %v5088_v20, %s5270_s19  ;;  %v5109_v20 = vld [vmem:[#allocation6 + $0x2c] ss:$16 sps:$4 sm:$0xff]  }
 0xdf9   :  { %3463 = vrot.lane.b32.xlu1 %v5797_v6, %s5261_s11  ;;  %s5275_s11 = smov 49  }
 0xdfd   :  { %3458 = vperm.xlu1 %5094, %v5797_v6   ;;  %v5278_v6 = vmov 95  }
 0xdfe   :  { %5095 = vset.pattern.permute.xlu0 %v5278_v6 }
 0xdff   :  { %3547 = vperm.xlu0 %5095, %v5160_v4  }
 0xe01   :  { %3550 = vrot.lane.b32.xlu1 %v5160_v4, %s5275_s11 }
 0xe02   :  { %5096 = vset.pattern.permute.xlu1 %v5280_v30 }
 0xe03   :  { %5097 = vset.pattern.permute.xlu0 %v5258_v3  ;;  %v3455_v32 = vpop.permute.xlu0 %3454 }
 0xe04   :  { %3789 = vperm.xlu0 %5097, %v3786_v62  }
 0xe05   :  { %3711 = vrot.lane.b32.xlu1 %v5160_v4, %s5279_s8 }
 0xe09   :  { %3708 = vperm.xlu1 %5096, %v5160_v4   ;;  %v5133_v4 = vld [vmem:[#allocation6 + $0xac] ss:$16 sps:$4 sm:$0xff]  }
 0xe67   :  { %v5090_v42 = vpop.permute.xlu1 %5089 }
 0xe68   :  { %v5092_v54 = vunpack.i.h.bf16 %v5090_v42  ;;  %v5091_v22 = vunpack.i.l.bf16 %v5090_v42  ;;  %v5111_v42 = vld [vmem:[#allocation6 + $0x28] ss:$16 sps:$4 sm:$0xff]  }
 0xe6a   :  { %v3345_v23 = vmax.f32 %v3339_v43, %v5092_v54  ;;  %v3344_v59 = vmax.f32 %v3338_v53, %v5091_v22  ;;  %v5105_v53 = vld [vmem:[#allocation6 + $0x8] ss:$16 sps:$4 sm:$0xff]   ;;  %v5115_v54 = vld [vmem:[#allocation6 + $0x4c] ss:$16 sps:$4 sm:$0xff]  }
 0xe6b   :  { %v3464_v28 = vpop.permute.xlu1 %3463  ;;  %v5117_v22 = vld [vmem:[#allocation6 + $0x48] ss:$16 sps:$4 sm:$0xff]  }
 0xe6c   :  { %4675 = vmatprep.mubr.f32.mxu0 %v3344_v59  ;;  %v5123_v59 = vld [vmem:[#allocation6 + $0x68] ss:$16 sps:$4 sm:$0xff]  }
 0xe6d   :  { %4676 = vmatmul.mubr.f32.vlgmr.msra.gmra.mrb[8].mxu0 %v3345_v23  ;;  %v5121_v23 = vld [vmem:[#allocation6 + $0x6c] ss:$16 sps:$4 sm:$0xff]  }
 0xe6e   :  { %4682 = vmatprep.mubr.msk.f32.mxu0 %vm2457_vm11, %v3462_v24  ;;  %v5127_v24 = vld [vmem:[#allocation6 + $0x8c] ss:$16 sps:$4 sm:$0xff]  }
 0xe7c   :  { %v3459_v31 = vpop.permute.xlu1 %3458 }
 0xe7e   :  { %v3548_v3 = vpop.permute.xlu0 %3547 }
 0xe80   :  { %v3551_v40 = vpop.permute.xlu1 %3550 }
 0xe84   :  { %v3712_v61 = vpop.permute.xlu1 %3711 }
 0xe88   :  { %v3709_v14 = vpop.permute.xlu1 %3708 }
 0xf40   :  { %v4677_v25 = vpop.f32.mrb[8].mxu0 }
 0xf41   :  { %v3444_v26 = vpop.f32.mrb[9].mxu0 }
 0xf42   :  { %v4845_v27 = vpack.c.bf16 %v4677_v25, %v3444_v26 }
 0xf44   :  { %4846 = vmatprep.subr.bf16.mxu0 %v4845_v27 }
 0xf45   :  { %4848 = vmatpush3.bf16.msra.mxu0 %v4845_v27  ;;  %v5145_v27 = vld [vmem:[#allocation6 + $0xec] ss:$16 sps:$4 sm:$0xff]  }
 0xf46   :  { %4852 = vmatprep.subr.bf16.mxu0 %v5276_v29 }
 0xf48   :  { %4683 = vmatmul.mubr.msk.f32.vlgmr.msra.gmra.mrb[10].mxu0 %vm2457_vm11, %v3464_v28  ;;  %v5147_v28 = vld [vmem:[#allocation6 + $0xe8] ss:$16 sps:$4 sm:$0xff]  }
 0xf49   :  { %4700 = vmatprep.mubr.msk.f32.mxu0 %vm5277_vm13, %v5238_v0  ;;  %4854 = vmatpush3.bf16.msra.mxu0 %v4386_v11 }
 0xf4a   :  { %4855 = vmatprep.subr.bf16.mxu0 %v5276_v29  ;;  %v3790_v29 = vpop.permute.xlu0 %3789 }
 0xf4d   :  { %4857 = vmatpush3.bf16.msra.mxu0 %v4431_v41 }
 0xf4e   :  { %4859 = vmatprep.subr.bf16.mxu0 %v5100_v63 }
0x101b   :  { %v4684_v33 = vpop.f32.mrb[10].mxu0 }
0x101c   :  { %v3541_v34 = vadd.f32 %v4684_v33, %v3459_v31  ;;  %v3535_v35 = vpop.f32.mrb[11].mxu0 }
0x101d   :  { %v3536_v36 = vadd.f32 %v3535_v35, %v3455_v32  ;;  %v5281_v32 = vmov 1966171168  }
0x101e   :  { %v3545_v37 = vadd.f32 %v4677_v25, %v3541_v34  ;;  %v5135_v25 = vld [vmem:[#allocation6 + $0xa8] ss:$16 sps:$4 sm:$0xff]   ;;  %v4108_v33 = vunpack.c.l.s4 %v5281_v32 }
0x101f   :  { %v3544_v38 = vadd.f32 %v3536_v36, %v3444_v26  ;;  %v5139_v26 = vld [vmem:[#allocation6 + $0xcc] ss:$16 sps:$4 sm:$0xff]  }
0x1020   :  { %v4109_v34 = vunpack.c.0.s8 %v4108_v33 }
0x1021   :  { %v4850_v39 = vpack.c.bf16 %v3545_v37, %v3544_v38 }
0x1022   :  { %v4112_v37 = vsub.s32 %v4109_v34, %v5464_v52 }
0x1023   :  { %4851 = vmatpush3.bf16.msra.mxu1 %v4850_v39 }
0x1024   :  { %4703 = vmatprep.subr.mxu1 %v5238_v0 }
0x1026   :  { %4690 = vmatmul.mubr.msk.f32.vlgmr.msra.gmra.mrb[8].mxu1 %vm2457_vm11, %v3551_v40 }
0x1027   :  { %4705 = vmatprep.mubr.msk.f32.mxu1 %vm5277_vm13, %v5238_v0 }
0x10f9   :  { %v3620_v44 = vpop.f32.mrb[8].mxu1 }
0x10fa   :  { %v3621_v45 = vadd.f32 %v3620_v44, %v3548_v3  ;;  %v4691_v48 = vpop.f32.mrb[9].mxu1 }
0x10fc   :  { %v3624_v55 = vmax.f32 %v3621_v45, 0.0 }
0x10fe   :  { %4701 = vmatmul.mubr.msk.f32.vlgmr.msra.gmra.mrb[12].mxu0 %vm3633_vm14, %v3624_v55 }
0x10ff   :  { %4024 = vmatprep.mubr.f32.mxu0 %v5238_v0  ;;  %4861 = vmatpush1.bf16.msra.mxu0 %v5102_v1 }
0x1100   :  { %4863 = vmatprep.subr.bf16.mxu0 %v5106_v56 }
0x11d1   :  { %v3703_v57 = vpop.f32.mrb[12].mxu0 }
0x11d2   :  { %v3704_v49 = vadd.f32 %v3703_v57, %v5737_v21  ;;  %v4702_v58 = vpop.f32.mrb[13].mxu0  ;;  %v5108_v21 = vld [vmem:[#allocation6 + $0x20] ss:$16 sps:$4 sm:$0xff]  }
0x11d3   :  { %4865 = vmatpush1.bf16.msra.mxu0 %v5108_v21 }
0x11d4   :  { %4704 = vmatpush3.msra.mxu1 %v3704_v49  ;;  %4867 = vmatprep.subr.bf16.mxu0 %v5112_v5 }
0x11d5   :  { %4706 = vmatmul.mubr.msk.f32.vlgmr.msra.gmra.mrb[10].mxu1 %vm363_vm3, %v3712_v61  ;;  %4708 = vmatprep.subr.mxu1 %v5238_v0 }
0x11d6   :  { %4710 = vmatprep.mubr.msk.f32.mxu1 %vm5277_vm13, %v5238_v0 }
0x11d7   :  { %4869 = vmatpush1.bf16.msra.mxu0 %v5114_v7 }
0x11d8   :  { %4871 = vmatprep.subr.bf16.mxu0 %v5118_v8 }
0x11db   :  { %4873 = vmatpush1.bf16.msra.mxu0 %v5120_v19 }
0x11dc   :  { %4875 = vmatprep.subr.bf16.mxu0 %v5124_v9 }
0x11df   :  { %4877 = vmatpush1.bf16.msra.mxu0 %v5126_v47 }
0x11e0   :  { %4879 = vmatprep.subr.bf16.mxu0 %v5130_v2 }
0x11e3   :  { %4881 = vmatpush1.bf16.msra.mxu0 %v5132_v51 }
0x11e4   :  { %4883 = vmatprep.subr.bf16.mxu0 %v5136_v12 }
0x11e7   :  { %4885 = vmatpush1.bf16.msra.mxu0 %v5138_v60 }
0x11e8   :  { %4887 = vmatprep.subr.bf16.mxu0 %v5142_v10 }
0x11eb   :  { %4889 = vmatpush1.bf16.msra.mxu0 %v5144_v13 }
0x12a8   :  { %v3781_v15 = vpop.f32.mrb[10].mxu1 }
0x12a9   :  { %v3782_v17 = vadd.f32 %v3781_v15, %v3709_v14  ;;  %v4707_v18 = vpop.f32.mrb[11].mxu1 }
0x12ab   :  { %v3785_v43 = vmax.f32 %v3782_v17, 0.0 }
0x12ad   :  { %4709 = vmatpush3.msra.mxu1 %v3785_v43 }
0x12ae   :  { %4711 = vmatmul.mubr.msk.f32.vlgmr.msra.gmra.mrb[12].mxu1 %vm363_vm3, %v3786_v62  ;;  %4891 = vmatprep.subr.bf16.mxu1 %v5103_v16 }
0x12af   :  { %4893 = vmatpush1.bf16.msra.mxu1 %v5105_v53  ;;  %4095 = vmatprep.mubr.f32.mxu1 %v5238_v0  ;;  %v5141_v0 = vld [vmem:[#allocation6 + $0xc8] ss:$16 sps:$4 sm:$0xff]  }
0x12b0   :  { %4895 = vmatprep.subr.bf16.mxu1 %v5109_v20 }
0x12b3   :  { %4897 = vmatpush1.bf16.msra.mxu1 %v5111_v42 }
0x12b4   :  { %4899 = vmatprep.subr.bf16.mxu1 %v5115_v54 }
0x12b7   :  { %4901 = vmatpush1.bf16.msra.mxu1 %v5117_v22 }
0x12b8   :  { %4903 = vmatprep.subr.bf16.mxu1 %v5121_v23 }
0x12bb   :  { %4905 = vmatpush1.bf16.msra.mxu1 %v5123_v59 }
0x12bc   :  { %4907 = vmatprep.subr.bf16.mxu1 %v5127_v24 }
0x12bf   :  { %4909 = vmatpush1.bf16.msra.mxu1 %v5129_v46 }
0x12c0   :  { %4911 = vmatprep.subr.bf16.mxu1 %v5133_v4 }
0x12c3   :  { %4913 = vmatpush1.bf16.msra.mxu1 %v5135_v25 }
0x12c4   :  { %4915 = vmatprep.subr.bf16.mxu1 %v5139_v26 }
0x12c7   :  { %4917 = vmatpush1.bf16.msra.mxu1 %v5141_v0 }
0x12c8   :  { %4919 = vmatprep.subr.bf16.mxu1 %v5145_v27 }
0x12cb   :  { %4921 = vmatpush1.bf16.msra.mxu1 %v5147_v28 }
0x1381   :  { %v3860_v11 = vpop.f32.mrb[12].mxu1 }
0x1382   :  { %v3861_v6 = vadd.f32 %v3860_v11, %v3790_v29  ;;  %v4712_v31 = vpop.f32.mrb[13].mxu1 }
0x1384   :  { %4025 = vmatmul.mubr.f32.vlgmr.msra.gmra.mrb[14].mxu0 %v3861_v6  ;;  %4096 = vmatmul.mubr.f32.vlgmr.msra.gmra.mrb[14].mxu1 %v3861_v6 }
0x1457   :  { %v4026_v35 = vpop.f32.mrb[14].mxu0  ;;  %v4097_v36 = vpop.f32.mrb[14].mxu1 }
0x1458   :  { %v4028_v38 = vpop.f32.mrb[15].mxu0  ;;  %v4099_v39 = vpop.f32.mrb[15].mxu1 }
0x1459   :  { %v4104_v40 = vcombine.low %v4026_v35, %v4028_v38  ;;  %v4131_v41 = vcombine.low %v4097_v36, %v4099_v39 }
0x145b   :  { %4106 = vst [vmem:[%s5932_s6] sm:$0x77] %v4104_v40  ;;  %v4113_v3 = vrot.slane %v4104_v40, %v4112_v37  ;;  %4223 = vst [vmem:[%s5932_s6 + $0x8] sm:$0x77] %v4131_v41  ;;  %v4141_v44 = vrot.slane %v4131_v41, %v4112_v37 }
0x145d   :  { %v4114_v45 = vcombine.high %v4113_v3, %v4113_v3  ;;  %v4142_v48 = vcombine.high %v4141_v44, %v4141_v44 }
0x145f   :  { %v4121_v55 = vrot.slane %v4114_v45, %v4112_v37  ;;  %v4149_v30 = vrot.slane %v4142_v48, %v4112_v37 }
0x1461   :  { %v4122_v52 = vcombine.high %v4121_v55, %v4121_v55  ;;  %v4150_v57 = vcombine.high %v4149_v30, %v4149_v30 }
0x1463   :  { %4128 = vst.msk [vmem:[%s5933_s7] sm:$0x3] %vm4126_vm15, %v4122_v52  ;;  %4224 = vst.msk [vmem:[%s5933_s7 + $0x2] sm:$0x3] %vm4126_vm15, %v4150_v57 }
0x1464   :  { %4162 = vsyncpa [#allocation3], 1 }
0x1465   :  { %4163 = vsyncpa [#allocation5], 1 }

</bundles_post_ra>
